<compile_context>
chip_gen: v7x
topology: tpu7x:2x2x1
jax: 0.10.0
libtpu: 0.0.40
codegen_flags: <defaults>
</compile_context>

<pallas_src>
import jax
import jax.numpy as jnp
import numpy as np
from jax.experimental import pallas as pl
from jax.experimental.pallas import tpu as pltpu  # noqa: F401 (TPU backend)

D_MODEL = 32
N_HEADS = 4
D_HEAD = D_MODEL // N_HEADS
D_FF = 64
LN_EPS = 1e-5
LANES = 128          # packed weight slab width
NEG_BIG = -1e30      # finite "-inf": softmax stays NaN-free on masked rows

# Weight slab rows:   [0,32) fused QKV1 | [32,64) fused QKV2
#                     [64,96) [FW1(0:64)|Wo1(64:96)|Wo2(96:128)] | [96,160) FW2
# Bias/LN slab rows:  0 b_qkv1, 1 b_qkv2, 2 bo1, 3 bo2, 4 fb1, 5 fb2,
#                     6/7 ln1 g/b, 8/9 ln2 g/b, 10/11 ln3 g/b (lanes from 0)


# ---------------------------------------------------------------------------
# In-kernel helpers (traced inside the Pallas kernel body)
# ---------------------------------------------------------------------------
def _layer_norm(v, gamma, beta):
    mu = jnp.mean(v, axis=-1, keepdims=True)
    var = jnp.mean((v - mu) ** 2, axis=-1, keepdims=True)
    return (v - mu) * jax.lax.rsqrt(var + LN_EPS) * gamma + beta


def _mha(q, k, v, bias):
    # q, k, v: [BS, D]; bias: [BS, BS] additive (block-diagonal over batch).
    # Head outputs stay in vregs and are lane-concatenated (no VMEM scratch).
    q = q * jnp.float32(1.0 / np.sqrt(D_HEAD))             # fold scale once
    outs = []
    for h in range(N_HEADS):                                # static unroll (4)
        lo, hi = h * D_HEAD, (h + 1) * D_HEAD
        s = jax.lax.dot_general(q[:, lo:hi], k[:, lo:hi],
                                (((1,), (1,)), ((), ())),
                                preferred_element_type=jnp.float32) + bias
        m = jnp.max(s, axis=-1, keepdims=True)
        e = jnp.exp(s - m)
        p = e * pl.reciprocal(jnp.sum(e, axis=-1, keepdims=True), approx=True)
        outs.append(jnp.dot(p, v[:, lo:hi],
                            preferred_element_type=jnp.float32))
    return jnp.concatenate(outs, axis=-1)                   # [BS, D]


# ---------------------------------------------------------------------------
# Wrapper: pack inputs/params into 3 slabs, single-step pallas_call
# ---------------------------------------------------------------------------
@jax.jit
def decoder_layer(x, y, mask_pad_x, mask_tril_y, params):
    B, S, D = x.shape
    assert D == D_MODEL
    BS = B * S
    LW = max(D, BS)                       # data-slab lane width

    # ---- pack the 17 parameter arrays into 2 slabs (2 DMA streams) ---------
    w1, b1 = params['mh1_w'], params['mh1_b']
    w2, b2 = params['mh2_w'], params['mh2_b']

    def pad_lanes(a, n=LANES):
        return jnp.pad(a, ((0, 0), (0, n - a.shape[-1])))

    w_slab = jnp.concatenate([
        pad_lanes(jnp.concatenate([w1[0], w1[1], w1[2]], axis=1)),   # [32,128]
        pad_lanes(jnp.concatenate([w2[0], w2[1], w2[2]], axis=1)),   # [32,128]
        jnp.concatenate([params['fc_w1'], w1[3], w2[3]], axis=1),    # [32,128]
        pad_lanes(params['fc_w2']),                                  # [64,128]
    ], axis=0)                                                       # [160,128]

    def row(v):
        return jnp.pad(v, (0, LANES - v.shape[0]))[None, :]

    b_slab = jnp.concatenate([
        row(jnp.concatenate([b1[0], b1[1], b1[2]])),                 # 0
        row(jnp.concatenate([b2[0], b2[1], b2[2]])),                 # 1
        row(b1[3]), row(b2[3]),                                      # 2, 3
        row(params['fc_b1'][0]), row(params['fc_b2'][0]),            # 4, 5
        row(params['mh1_ln'][0]), row(params['mh1_ln'][1]),          # 6, 7
        row(params['mh2_ln'][0]), row(params['mh2_ln'][1]),          # 8, 9
        row(params['fc_ln'][0]), row(params['fc_ln'][1]),            # 10, 11
        jnp.zeros((4, LANES), jnp.float32),
    ], axis=0)                                                       # [16,128]

    # ---- masks -> f32 additive biases, block-diagonal over folded batch ----
    def block_diag_bias(mask_bss):            # [B,S,S] bool, True = masked
        big = jnp.where(mask_bss, NEG_BIG, 0.0).astype(jnp.float32)
        eye = jnp.eye(B, dtype=jnp.float32)
        off = ((1.0 - eye) * NEG_BIG)[:, None, :, None]
        return (jnp.einsum('ac,aqk->aqck', eye, big) + off).reshape(BS, BS)

    bias_tril = block_diag_bias(mask_tril_y[:, 0])
    bias_pad = block_diag_bias(mask_pad_x[:, 0])

    # ---- data slab: x rows, y rows, the two biases (one DMA stream) --------
    def to_lw(a):
        return jnp.pad(a, ((0, 0), (0, LW - a.shape[-1])))

    data = jnp.concatenate([
        to_lw(x.reshape(BS, D)), to_lw(y.reshape(BS, D)),
        to_lw(bias_tril), to_lw(bias_pad),
    ], axis=0)                                                       # [4*BS,LW]

    # ---- kernel (single grid step, everything resident in VMEM) ------------
    def kernel(data_ref, w_ref, b_ref, out_ref):
        x_ = data_ref[0:BS, 0:D_MODEL]
        y_ = data_ref[BS:2 * BS, 0:D_MODEL]
        bias_tril_ = data_ref[2 * BS:3 * BS, 0:BS]
        bias_pad_ = data_ref[3 * BS:4 * BS, 0:BS]

        w_qkv1 = w_ref[0:D_MODEL, :]
        w_qkv2 = w_ref[D_MODEL:2 * D_MODEL, :]
        w_misc = w_ref[2 * D_MODEL:3 * D_MODEL, :]     # [FW1 | Wo1 | Wo2]
        w_fc2 = w_ref[3 * D_MODEL:3 * D_MODEL + D_FF, :]

        # ---- mh1: masked self-attention on y (Q = K = V = y) ---------------
        yn = _layer_norm(y_, b_ref[6, 0:D_MODEL], b_ref[7, 0:D_MODEL])
        qkv = jnp.dot(yn, w_qkv1, preferred_element_type=jnp.float32) + b_ref[0]
        att = _mha(qkv[:, 0:D_MODEL], qkv[:, D_MODEL:2 * D_MODEL],
                   qkv[:, 2 * D_MODEL:3 * D_MODEL], bias_tril_)
        o = jnp.dot(att, w_misc, preferred_element_type=jnp.float32)
        y_ = y_ + o[:, D_FF:D_FF + D_MODEL] + b_ref[2, 0:D_MODEL]

        # ---- mh2: cross-attention (Q = y, K = V = x) ------------------------
        g2, be2 = b_ref[8, 0:D_MODEL], b_ref[9, 0:D_MODEL]
        yn = _layer_norm(y_, g2, be2)
        xn = _layer_norm(x_, g2, be2)
        qy = jnp.dot(yn, w_qkv2, preferred_element_type=jnp.float32) + b_ref[1]
        kvx = jnp.dot(xn, w_qkv2, preferred_element_type=jnp.float32) + b_ref[1]
        att = _mha(qy[:, 0:D_MODEL], kvx[:, D_MODEL:2 * D_MODEL],
                   kvx[:, 2 * D_MODEL:3 * D_MODEL], bias_pad_)
        o = jnp.dot(att, w_misc, preferred_element_type=jnp.float32)
        y_ = y_ + o[:, D_FF + D_MODEL:D_FF + 2 * D_MODEL] + b_ref[3, 0:D_MODEL]

        # ---- FC: LN -> Linear(32,64) -> ReLU -> Linear(64,32) + residual ----
        yn = _layer_norm(y_, b_ref[10, 0:D_MODEL], b_ref[11, 0:D_MODEL])
        h = jnp.dot(yn, w_misc, preferred_element_type=jnp.float32)[:, 0:D_FF]
        h = jnp.maximum(h + b_ref[4, 0:D_FF], 0.0)
        o = jnp.dot(h, w_fc2, preferred_element_type=jnp.float32)[:, 0:D_MODEL]
        # TODO(synk): nn.Dropout(p=0.1) in MultiHead/FC blocks omitted (eval).
        out_ref[...] = (y_ + o + b_ref[5, 0:D_MODEL]).astype(out_ref.dtype)

    out = pl.pallas_call(
        kernel,
        out_shape=jax.ShapeDtypeStruct((BS, D), x.dtype),
        grid=(1,),
        in_specs=[
            pl.BlockSpec((4 * BS, LW), lambda i: (0, 0)),
            pl.BlockSpec(w_slab.shape, lambda i: (0, 0)),
            pl.BlockSpec(b_slab.shape, lambda i: (0, 0)),
        ],
        out_specs=pl.BlockSpec((BS, D), lambda i: (0, 0)),
    )(data, w_slab, b_slab)
    return out.reshape(B, S, D)


# ---------------------------------------------------------------------------
# Deterministic parameter init (PyTorch-Linear-like uniform init, LN = 1/0)
# ---------------------------------------------------------------------------
def init_params(key):
    def linear(k, din, dout):
        kw, kb = jax.random.split(k)
        bound = 1.0 / np.sqrt(din)
        w = jax.random.uniform(kw, (din, dout), jnp.float32, -bound, bound)
        b = jax.random.uniform(kb, (dout,), jnp.float32, -bound, bound)
        return w, b

    def mh_params(k):
        ks = jax.random.split(k, 4)
        ws, bs = zip(*[linear(kk, D_MODEL, D_MODEL) for kk in ks])
        ln = jnp.stack([jnp.ones(D_MODEL, jnp.float32),
                        jnp.zeros(D_MODEL, jnp.float32)])
        return jnp.stack(ws), jnp.stack(bs), ln

    k1, k2, k3, k4 = jax.random.split(key, 4)
    mh1_w, mh1_b, mh1_ln = mh_params(k1)
    mh2_w, mh2_b, mh2_ln = mh_params(k2)
    fw1, fb1 = linear(k3, D_MODEL, D_FF)
    fw2, fb2 = linear(k4, D_FF, D_MODEL)
    fc_ln = jnp.stack([jnp.ones(D_MODEL, jnp.float32),
                       jnp.zeros(D_MODEL, jnp.float32)])
    return dict(mh1_w=mh1_w, mh1_b=mh1_b, mh1_ln=mh1_ln,
                mh2_w=mh2_w, mh2_b=mh2_b, mh2_ln=mh2_ln,
                fc_w1=fw1, fc_b1=fb1.reshape(1, D_FF),
                fc_w2=fw2, fc_b2=fb2.reshape(1, D_MODEL),
                fc_ln=fc_ln)


# ---------------------------------------------------------------------------
# Pure-JAX reference (mirrors the PyTorch forward) for a sanity check
# ---------------------------------------------------------------------------
def reference(x, y, mask_pad, mask_tril, p):
    def ln_fn(v, ln):
        mu = jnp.mean(v, -1, keepdims=True)
        var = jnp.mean((v - mu) ** 2, -1, keepdims=True)
        return (v - mu) / jnp.sqrt(var + LN_EPS) * ln[0] + ln[1]

    def mh(Q, K, V, mask, W, Bb, ln):
        b, S, D = Q.shape
        cQ = Q
        Qn, Kn, Vn = ln_fn(Q, ln), ln_fn(K, ln), ln_fn(V, ln)
        q = Qn @ W[0] + Bb[0]
        k = Kn @ W[1] + Bb[1]
        v = Vn @ W[2] + Bb[2]
        qh = q.reshape(b, S, N_HEADS, D_HEAD).transpose(0, 2, 1, 3)
        kh = k.reshape(b, S, N_HEADS, D_HEAD).transpose(0, 2, 1, 3)
        vh = v.reshape(b, S, N_HEADS, D_HEAD).transpose(0, 2, 1, 3)
        s = jnp.einsum('bhqd,bhkd->bhqk', qh, kh) / np.sqrt(D_HEAD)
        s = jnp.where(mask, -jnp.inf, s)
        a = jax.nn.softmax(s, axis=-1)
        o = jnp.einsum('bhqk,bhkd->bhqd', a, vh).transpose(0, 2, 1, 3)
        o = o.reshape(b, S, D)
        return cQ + (o @ W[3] + Bb[3])

    y1 = mh(y, y, y, mask_tril, p['mh1_w'], p['mh1_b'], p['mh1_ln'])
    y2 = mh(y1, x, x, mask_pad, p['mh2_w'], p['mh2_b'], p['mh2_ln'])
    yn = ln_fn(y2, p['fc_ln'])
    h = jax.nn.relu(yn @ p['fc_w1'] + p['fc_b1'][0])
    return y2 + h @ p['fc_w2'] + p['fc_b2'][0]


if __name__ == "__main__":
    B, S = 2, 8
    key = jax.random.PRNGKey(0)
    kx, ky, kp = jax.random.split(key, 3)

    x = jax.random.normal(kx, (B, S, D_MODEL), jnp.float32)
    y = jax.random.normal(ky, (B, S, D_MODEL), jnp.float32)

    # Padding mask for x: last keys are padded (True = masked), per batch.
    valid_len = jnp.array([6, 7])
    pad_cols = jnp.arange(S)[None, :] >= valid_len[:, None]          # [B, S]
    mask_pad_x = jnp.broadcast_to(pad_cols[:, None, None, :], (B, 1, S, S))
    # Causal (upper-triangular) mask for y.
    mask_tril_y = jnp.broadcast_to(
        jnp.triu(jnp.ones((S, S), dtype=bool), k=1)[None, None], (B, 1, S, S))

    params = init_params(kp)

    out = decoder_layer(x, y, mask_pad_x, mask_tril_y, params)
    out = jax.block_until_ready(out)

    ref = reference(x, y, mask_pad_x, mask_tril_y, params)
    np.testing.assert_allclose(np.asarray(out), np.asarray(ref),
                               rtol=2e-2, atol=2e-2)
    print("KERNEL_OK")
</pallas_src>

<mosaic_0001>
module attributes {stable_mosaic.version = 11 : i64} {
  func.func @kernel(%arg0: i32, %arg1: memref<64x32xf32, #tpu.memory_space<vmem>>, %arg2: memref<160x128xf32, #tpu.memory_space<vmem>>, %arg3: memref<16x128xf32, #tpu.memory_space<vmem>>, %arg4: memref<16x32xf32, #tpu.memory_space<vmem>>) attributes {dimension_semantics = [#tpu.dimension_semantics<arbitrary>], iteration_bounds = array<i64: 1>, scalar_prefetch = 0 : i64, scratch_operands = 0 : i64, tpu.core_type = #tpu.core_type<tc>, window_params = [{pipeline_mode = #tpu.pipeline_mode<synchronous>, transform_indices = @transform_0, window_bounds = array<i64: 64, 32>}, {pipeline_mode = #tpu.pipeline_mode<synchronous>, transform_indices = @transform_1, window_bounds = array<i64: 160, 128>}, {pipeline_mode = #tpu.pipeline_mode<synchronous>, transform_indices = @transform_2, window_bounds = array<i64: 16, 128>}, {pipeline_mode = #tpu.pipeline_mode<synchronous>, transform_indices = @transform_3, window_bounds = array<i64: 16, 32>}]} {
    %c0 = arith.constant 0 : index
    %c0_0 = arith.constant 0 : index
    %0 = vector.load %arg1[%c0, %c0_0] : memref<64x32xf32, #tpu.memory_space<vmem>>, vector<16x32xf32>
    %c16 = arith.constant 16 : index
    %c0_1 = arith.constant 0 : index
    %1 = vector.load %arg1[%c16, %c0_1] : memref<64x32xf32, #tpu.memory_space<vmem>>, vector<16x32xf32>
    %c32 = arith.constant 32 : index
    %c0_2 = arith.constant 0 : index
    %2 = vector.load %arg1[%c32, %c0_2] : memref<64x32xf32, #tpu.memory_space<vmem>>, vector<16x16xf32>
    %c48 = arith.constant 48 : index
    %c0_3 = arith.constant 0 : index
    %3 = vector.load %arg1[%c48, %c0_3] : memref<64x32xf32, #tpu.memory_space<vmem>>, vector<16x16xf32>
    %c0_4 = arith.constant 0 : index
    %c0_5 = arith.constant 0 : index
    %4 = vector.load %arg2[%c0_4, %c0_5] : memref<160x128xf32, #tpu.memory_space<vmem>>, vector<32x128xf32>
    %c32_6 = arith.constant 32 : index
    %c0_7 = arith.constant 0 : index
    %5 = vector.load %arg2[%c32_6, %c0_7] : memref<160x128xf32, #tpu.memory_space<vmem>>, vector<32x128xf32>
    %c64 = arith.constant 64 : index
    %c0_8 = arith.constant 0 : index
    %6 = vector.load %arg2[%c64, %c0_8] : memref<160x128xf32, #tpu.memory_space<vmem>>, vector<32x128xf32>
    %c96 = arith.constant 96 : index
    %c0_9 = arith.constant 0 : index
    %7 = vector.load %arg2[%c96, %c0_9] : memref<160x128xf32, #tpu.memory_space<vmem>>, vector<64x128xf32>
    %c6 = arith.constant 6 : index
    %c0_10 = arith.constant 0 : index
    %8 = vector.load %arg3[%c6, %c0_10] : memref<16x128xf32, #tpu.memory_space<vmem>>, vector<1x32xf32>
    %9 = vector.shape_cast %8 : vector<1x32xf32> to vector<32xf32>
    %c7 = arith.constant 7 : index
    %c0_11 = arith.constant 0 : index
    %10 = vector.load %arg3[%c7, %c0_11] : memref<16x128xf32, #tpu.memory_space<vmem>>, vector<1x32xf32>
    %11 = vector.shape_cast %10 : vector<1x32xf32> to vector<32xf32>
    %cst = arith.constant dense<0.000000e+00> : vector<16xf32>
    %12 = vector.multi_reduction <add>, %1, %cst [1] : vector<16x32xf32> to vector<16xf32>
    %13 = vector.shape_cast %12 : vector<16xf32> to vector<16x1xf32>
    %cst_12 = arith.constant 3.200000e+01 : f32
    %14 = vector.broadcast %cst_12 : f32 to vector<16x1xf32>
    %15 = arith.divf %13, %14 : vector<16x1xf32>
    %16 = vector.broadcast %15 : vector<16x1xf32> to vector<16x32xf32>
    %17 = arith.subf %1, %16 : vector<16x32xf32>
    %18 = arith.mulf %17, %17 : vector<16x32xf32>
    %cst_13 = arith.constant dense<0.000000e+00> : vector<16xf32>
    %19 = vector.multi_reduction <add>, %18, %cst_13 [1] : vector<16x32xf32> to vector<16xf32>
    %20 = vector.shape_cast %19 : vector<16xf32> to vector<16x1xf32>
    %cst_14 = arith.constant 3.200000e+01 : f32
    %21 = vector.broadcast %cst_14 : f32 to vector<16x1xf32>
    %22 = arith.divf %20, %21 : vector<16x1xf32>
    %23 = vector.broadcast %15 : vector<16x1xf32> to vector<16x32xf32>
    %24 = arith.subf %1, %23 : vector<16x32xf32>
    %cst_15 = arith.constant 9.99999974E-6 : f32
    %25 = vector.broadcast %cst_15 : f32 to vector<16x1xf32>
    %26 = arith.addf %22, %25 : vector<16x1xf32>
    %27 = math.rsqrt %26 : vector<16x1xf32>
    %28 = vector.broadcast %27 : vector<16x1xf32> to vector<16x32xf32>
    %29 = arith.mulf %24, %28 : vector<16x32xf32>
    %30 = vector.shape_cast %9 : vector<32xf32> to vector<1x32xf32>
    %31 = vector.broadcast %30 : vector<1x32xf32> to vector<16x32xf32>
    %32 = arith.mulf %29, %31 : vector<16x32xf32>
    %33 = vector.shape_cast %11 : vector<32xf32> to vector<1x32xf32>
    %34 = vector.broadcast %33 : vector<1x32xf32> to vector<16x32xf32>
    %35 = arith.addf %32, %34 : vector<16x32xf32>
    %cst_16 = arith.constant dense<0.000000e+00> : vector<16x128xf32>
    %36 = tpu.matmul %35, %4, %cst_16 {dimension_numbers = #tpu.dot_dimension_numbers<[1], [0], [0], [1], [0, 0, 1, 1], [], []>} : vector<16x32xf32>, vector<32x128xf32>, vector<16x128xf32> -> vector<16x128xf32>
    %c0_17 = arith.constant 0 : index
    %c0_18 = arith.constant 0 : index
    %37 = vector.load %arg3[%c0_17, %c0_18] : memref<16x128xf32, #tpu.memory_space<vmem>>, vector<1x128xf32>
    %38 = vector.shape_cast %37 : vector<1x128xf32> to vector<128xf32>
    %39 = vector.shape_cast %38 : vector<128xf32> to vector<1x128xf32>
    %40 = vector.broadcast %39 : vector<1x128xf32> to vector<16x128xf32>
    %41 = arith.addf %36, %40 : vector<16x128xf32>
    %42 = vector.extract_strided_slice %41 {offsets = [0, 0], sizes = [16, 32], strides = [1, 1]} : vector<16x128xf32> to vector<16x32xf32>
    %43 = vector.extract_strided_slice %41 {offsets = [0, 32], sizes = [16, 32], strides = [1, 1]} : vector<16x128xf32> to vector<16x32xf32>
    %44 = vector.extract_strided_slice %41 {offsets = [0, 64], sizes = [16, 32], strides = [1, 1]} : vector<16x128xf32> to vector<16x32xf32>
    %cst_19 = arith.constant 0.353553385 : f32
    %45 = vector.broadcast %cst_19 : f32 to vector<16x32xf32>
    %46 = arith.mulf %42, %45 : vector<16x32xf32>
    %47 = vector.extract_strided_slice %46 {offsets = [0, 0], sizes = [16, 8], strides = [1, 1]} : vector<16x32xf32> to vector<16x8xf32>
    %48 = vector.extract_strided_slice %43 {offsets = [0, 0], sizes = [16, 8], strides = [1, 1]} : vector<16x32xf32> to vector<16x8xf32>
    %cst_20 = arith.constant dense<0.000000e+00> : vector<16x16xf32>
    %49 = tpu.matmul %47, %48, %cst_20 {dimension_numbers = #tpu.dot_dimension_numbers<[1], [1], [0], [0], [0, 0, 1, 0], [], []>} : vector<16x8xf32>, vector<16x8xf32>, vector<16x16xf32> -> vector<16x16xf32>
    %50 = arith.addf %49, %2 : vector<16x16xf32>
    %cst_21 = arith.constant dense<0xFF800000> : vector<16xf32>
    %51 = vector.multi_reduction <maximumf>, %50, %cst_21 [1] : vector<16x16xf32> to vector<16xf32>
    %52 = vector.shape_cast %51 : vector<16xf32> to vector<16x1xf32>
    %53 = vector.broadcast %52 : vector<16x1xf32> to vector<16x16xf32>
    %54 = arith.subf %50, %53 : vector<16x16xf32>
    %55 = math.exp %54 : vector<16x16xf32>
    %cst_22 = arith.constant dense<0.000000e+00> : vector<16xf32>
    %56 = vector.multi_reduction <add>, %55, %cst_22 [1] : vector<16x16xf32> to vector<16xf32>
    %57 = vector.shape_cast %56 : vector<16xf32> to vector<16x1xf32>
    %58 = tpu.reciprocal %57 {approx = true} : vector<16x1xf32> -> vector<16x1xf32>
    %59 = vector.broadcast %58 : vector<16x1xf32> to vector<16x16xf32>
    %60 = arith.mulf %55, %59 : vector<16x16xf32>
    %61 = vector.extract_strided_slice %44 {offsets = [0, 0], sizes = [16, 8], strides = [1, 1]} : vector<16x32xf32> to vector<16x8xf32>
    %cst_23 = arith.constant dense<0.000000e+00> : vector<16x8xf32>
    %62 = tpu.matmul %60, %61, %cst_23 {dimension_numbers = #tpu.dot_dimension_numbers<[1], [0], [0], [1], [0, 0, 1, 1], [], []>} : vector<16x16xf32>, vector<16x8xf32>, vector<16x8xf32> -> vector<16x8xf32>
    %63 = vector.extract_strided_slice %46 {offsets = [0, 8], sizes = [16, 8], strides = [1, 1]} : vector<16x32xf32> to vector<16x8xf32>
    %64 = vector.extract_strided_slice %43 {offsets = [0, 8], sizes = [16, 8], strides = [1, 1]} : vector<16x32xf32> to vector<16x8xf32>
    %cst_24 = arith.constant dense<0.000000e+00> : vector<16x16xf32>
    %65 = tpu.matmul %63, %64, %cst_24 {dimension_numbers = #tpu.dot_dimension_numbers<[1], [1], [0], [0], [0, 0, 1, 0], [], []>} : vector<16x8xf32>, vector<16x8xf32>, vector<16x16xf32> -> vector<16x16xf32>
    %66 = arith.addf %65, %2 : vector<16x16xf32>
    %cst_25 = arith.constant dense<0xFF800000> : vector<16xf32>
    %67 = vector.multi_reduction <maximumf>, %66, %cst_25 [1] : vector<16x16xf32> to vector<16xf32>
    %68 = vector.shape_cast %67 : vector<16xf32> to vector<16x1xf32>
    %69 = vector.broadcast %68 : vector<16x1xf32> to vector<16x16xf32>
    %70 = arith.subf %66, %69 : vector<16x16xf32>
    %71 = math.exp %70 : vector<16x16xf32>
    %cst_26 = arith.constant dense<0.000000e+00> : vector<16xf32>
    %72 = vector.multi_reduction <add>, %71, %cst_26 [1] : vector<16x16xf32> to vector<16xf32>
    %73 = vector.shape_cast %72 : vector<16xf32> to vector<16x1xf32>
    %74 = tpu.reciprocal %73 {approx = true} : vector<16x1xf32> -> vector<16x1xf32>
    %75 = vector.broadcast %74 : vector<16x1xf32> to vector<16x16xf32>
    %76 = arith.mulf %71, %75 : vector<16x16xf32>
    %77 = vector.extract_strided_slice %44 {offsets = [0, 8], sizes = [16, 8], strides = [1, 1]} : vector<16x32xf32> to vector<16x8xf32>
    %cst_27 = arith.constant dense<0.000000e+00> : vector<16x8xf32>
    %78 = tpu.matmul %76, %77, %cst_27 {dimension_numbers = #tpu.dot_dimension_numbers<[1], [0], [0], [1], [0, 0, 1, 1], [], []>} : vector<16x16xf32>, vector<16x8xf32>, vector<16x8xf32> -> vector<16x8xf32>
    %79 = vector.extract_strided_slice %46 {offsets = [0, 16], sizes = [16, 8], strides = [1, 1]} : vector<16x32xf32> to vector<16x8xf32>
    %80 = vector.extract_strided_slice %43 {offsets = [0, 16], sizes = [16, 8], strides = [1, 1]} : vector<16x32xf32> to vector<16x8xf32>
    %cst_28 = arith.constant dense<0.000000e+00> : vector<16x16xf32>
    %81 = tpu.matmul %79, %80, %cst_28 {dimension_numbers = #tpu.dot_dimension_numbers<[1], [1], [0], [0], [0, 0, 1, 0], [], []>} : vector<16x8xf32>, vector<16x8xf32>, vector<16x16xf32> -> vector<16x16xf32>
    %82 = arith.addf %81, %2 : vector<16x16xf32>
    %cst_29 = arith.constant dense<0xFF800000> : vector<16xf32>
    %83 = vector.multi_reduction <maximumf>, %82, %cst_29 [1] : vector<16x16xf32> to vector<16xf32>
    %84 = vector.shape_cast %83 : vector<16xf32> to vector<16x1xf32>
    %85 = vector.broadcast %84 : vector<16x1xf32> to vector<16x16xf32>
    %86 = arith.subf %82, %85 : vector<16x16xf32>
    %87 = math.exp %86 : vector<16x16xf32>
    %cst_30 = arith.constant dense<0.000000e+00> : vector<16xf32>
    %88 = vector.multi_reduction <add>, %87, %cst_30 [1] : vector<16x16xf32> to vector<16xf32>
    %89 = vector.shape_cast %88 : vector<16xf32> to vector<16x1xf32>
    %90 = tpu.reciprocal %89 {approx = true} : vector<16x1xf32> -> vector<16x1xf32>
    %91 = vector.broadcast %90 : vector<16x1xf32> to vector<16x16xf32>
    %92 = arith.mulf %87, %91 : vector<16x16xf32>
    %93 = vector.extract_strided_slice %44 {offsets = [0, 16], sizes = [16, 8], strides = [1, 1]} : vector<16x32xf32> to vector<16x8xf32>
    %cst_31 = arith.constant dense<0.000000e+00> : vector<16x8xf32>
    %94 = tpu.matmul %92, %93, %cst_31 {dimension_numbers = #tpu.dot_dimension_numbers<[1], [0], [0], [1], [0, 0, 1, 1], [], []>} : vector<16x16xf32>, vector<16x8xf32>, vector<16x8xf32> -> vector<16x8xf32>
    %95 = vector.extract_strided_slice %46 {offsets = [0, 24], sizes = [16, 8], strides = [1, 1]} : vector<16x32xf32> to vector<16x8xf32>
    %96 = vector.extract_strided_slice %43 {offsets = [0, 24], sizes = [16, 8], strides = [1, 1]} : vector<16x32xf32> to vector<16x8xf32>
    %cst_32 = arith.constant dense<0.000000e+00> : vector<16x16xf32>
    %97 = tpu.matmul %95, %96, %cst_32 {dimension_numbers = #tpu.dot_dimension_numbers<[1], [1], [0], [0], [0, 0, 1, 0], [], []>} : vector<16x8xf32>, vector<16x8xf32>, vector<16x16xf32> -> vector<16x16xf32>
    %98 = arith.addf %97, %2 : vector<16x16xf32>
    %cst_33 = arith.constant dense<0xFF800000> : vector<16xf32>
    %99 = vector.multi_reduction <maximumf>, %98, %cst_33 [1] : vector<16x16xf32> to vector<16xf32>
    %100 = vector.shape_cast %99 : vector<16xf32> to vector<16x1xf32>
    %101 = vector.broadcast %100 : vector<16x1xf32> to vector<16x16xf32>
    %102 = arith.subf %98, %101 : vector<16x16xf32>
    %103 = math.exp %102 : vector<16x16xf32>
    %cst_34 = arith.constant dense<0.000000e+00> : vector<16xf32>
    %104 = vector.multi_reduction <add>, %103, %cst_34 [1] : vector<16x16xf32> to vector<16xf32>
    %105 = vector.shape_cast %104 : vector<16xf32> to vector<16x1xf32>
    %106 = tpu.reciprocal %105 {approx = true} : vector<16x1xf32> -> vector<16x1xf32>
    %107 = vector.broadcast %106 : vector<16x1xf32> to vector<16x16xf32>
    %108 = arith.mulf %103, %107 : vector<16x16xf32>
    %109 = vector.extract_strided_slice %44 {offsets = [0, 24], sizes = [16, 8], strides = [1, 1]} : vector<16x32xf32> to vector<16x8xf32>
    %cst_35 = arith.constant dense<0.000000e+00> : vector<16x8xf32>
    %110 = tpu.matmul %108, %109, %cst_35 {dimension_numbers = #tpu.dot_dimension_numbers<[1], [0], [0], [1], [0, 0, 1, 1], [], []>} : vector<16x16xf32>, vector<16x8xf32>, vector<16x8xf32> -> vector<16x8xf32>
    %111 = tpu.concatenate %62, %78, %94, %110 in 1 : vector<16x8xf32>, vector<16x8xf32>, vector<16x8xf32>, vector<16x8xf32> -> vector<16x32xf32>
    %cst_36 = arith.constant dense<0.000000e+00> : vector<16x128xf32>
    %112 = tpu.matmul %111, %6, %cst_36 {dimension_numbers = #tpu.dot_dimension_numbers<[1], [0], [0], [1], [0, 0, 1, 1], [], []>} : vector<16x32xf32>, vector<32x128xf32>, vector<16x128xf32> -> vector<16x128xf32>
    %113 = vector.extract_strided_slice %112 {offsets = [0, 64], sizes = [16, 32], strides = [1, 1]} : vector<16x128xf32> to vector<16x32xf32>
    %114 = arith.addf %1, %113 : vector<16x32xf32>
    %c2 = arith.constant 2 : index
    %c0_37 = arith.constant 0 : index
    %115 = vector.load %arg3[%c2, %c0_37] : memref<16x128xf32, #tpu.memory_space<vmem>>, vector<1x32xf32>
    %116 = vector.shape_cast %115 : vector<1x32xf32> to vector<32xf32>
    %117 = vector.shape_cast %116 : vector<32xf32> to vector<1x32xf32>
    %118 = vector.broadcast %117 : vector<1x32xf32> to vector<16x32xf32>
    %119 = arith.addf %114, %118 : vector<16x32xf32>
    %c8 = arith.constant 8 : index
    %c0_38 = arith.constant 0 : index
    %120 = vector.load %arg3[%c8, %c0_38] : memref<16x128xf32, #tpu.memory_space<vmem>>, vector<1x32xf32>
    %121 = vector.shape_cast %120 : vector<1x32xf32> to vector<32xf32>
    %c9 = arith.constant 9 : index
    %c0_39 = arith.constant 0 : index
    %122 = vector.load %arg3[%c9, %c0_39] : memref<16x128xf32, #tpu.memory_space<vmem>>, vector<1x32xf32>
    %123 = vector.shape_cast %122 : vector<1x32xf32> to vector<32xf32>
    %cst_40 = arith.constant dense<0.000000e+00> : vector<16xf32>
    %124 = vector.multi_reduction <add>, %119, %cst_40 [1] : vector<16x32xf32> to vector<16xf32>
    %125 = vector.shape_cast %124 : vector<16xf32> to vector<16x1xf32>
    %cst_41 = arith.constant 3.200000e+01 : f32
    %126 = vector.broadcast %cst_41 : f32 to vector<16x1xf32>
    %127 = arith.divf %125, %126 : vector<16x1xf32>
    %128 = vector.broadcast %127 : vector<16x1xf32> to vector<16x32xf32>
    %129 = arith.subf %119, %128 : vector<16x32xf32>
    %130 = arith.mulf %129, %129 : vector<16x32xf32>
    %cst_42 = arith.constant dense<0.000000e+00> : vector<16xf32>
    %131 = vector.multi_reduction <add>, %130, %cst_42 [1] : vector<16x32xf32> to vector<16xf32>
    %132 = vector.shape_cast %131 : vector<16xf32> to vector<16x1xf32>
    %cst_43 = arith.constant 3.200000e+01 : f32
    %133 = vector.broadcast %cst_43 : f32 to vector<16x1xf32>
    %134 = arith.divf %132, %133 : vector<16x1xf32>
    %135 = vector.broadcast %127 : vector<16x1xf32> to vector<16x32xf32>
    %136 = arith.subf %119, %135 : vector<16x32xf32>
    %cst_44 = arith.constant 9.99999974E-6 : f32
    %137 = vector.broadcast %cst_44 : f32 to vector<16x1xf32>
    %138 = arith.addf %134, %137 : vector<16x1xf32>
    %139 = math.rsqrt %138 : vector<16x1xf32>
    %140 = vector.broadcast %139 : vector<16x1xf32> to vector<16x32xf32>
    %141 = arith.mulf %136, %140 : vector<16x32xf32>
    %142 = vector.shape_cast %121 : vector<32xf32> to vector<1x32xf32>
    %143 = vector.broadcast %142 : vector<1x32xf32> to vector<16x32xf32>
    %144 = arith.mulf %141, %143 : vector<16x32xf32>
    %145 = vector.shape_cast %123 : vector<32xf32> to vector<1x32xf32>
    %146 = vector.broadcast %145 : vector<1x32xf32> to vector<16x32xf32>
    %147 = arith.addf %144, %146 : vector<16x32xf32>
    %cst_45 = arith.constant dense<0.000000e+00> : vector<16xf32>
    %148 = vector.multi_reduction <add>, %0, %cst_45 [1] : vector<16x32xf32> to vector<16xf32>
    %149 = vector.shape_cast %148 : vector<16xf32> to vector<16x1xf32>
    %cst_46 = arith.constant 3.200000e+01 : f32
    %150 = vector.broadcast %cst_46 : f32 to vector<16x1xf32>
    %151 = arith.divf %149, %150 : vector<16x1xf32>
    %152 = vector.broadcast %151 : vector<16x1xf32> to vector<16x32xf32>
    %153 = arith.subf %0, %152 : vector<16x32xf32>
    %154 = arith.mulf %153, %153 : vector<16x32xf32>
    %cst_47 = arith.constant dense<0.000000e+00> : vector<16xf32>
    %155 = vector.multi_reduction <add>, %154, %cst_47 [1] : vector<16x32xf32> to vector<16xf32>
    %156 = vector.shape_cast %155 : vector<16xf32> to vector<16x1xf32>
    %cst_48 = arith.constant 3.200000e+01 : f32
    %157 = vector.broadcast %cst_48 : f32 to vector<16x1xf32>
    %158 = arith.divf %156, %157 : vector<16x1xf32>
    %159 = vector.broadcast %151 : vector<16x1xf32> to vector<16x32xf32>
    %160 = arith.subf %0, %159 : vector<16x32xf32>
    %cst_49 = arith.constant 9.99999974E-6 : f32
    %161 = vector.broadcast %cst_49 : f32 to vector<16x1xf32>
    %162 = arith.addf %158, %161 : vector<16x1xf32>
    %163 = math.rsqrt %162 : vector<16x1xf32>
    %164 = vector.broadcast %163 : vector<16x1xf32> to vector<16x32xf32>
    %165 = arith.mulf %160, %164 : vector<16x32xf32>
    %166 = vector.shape_cast %121 : vector<32xf32> to vector<1x32xf32>
    %167 = vector.broadcast %166 : vector<1x32xf32> to vector<16x32xf32>
    %168 = arith.mulf %165, %167 : vector<16x32xf32>
    %169 = vector.shape_cast %123 : vector<32xf32> to vector<1x32xf32>
    %170 = vector.broadcast %169 : vector<1x32xf32> to vector<16x32xf32>
    %171 = arith.addf %168, %170 : vector<16x32xf32>
    %cst_50 = arith.constant dense<0.000000e+00> : vector<16x128xf32>
    %172 = tpu.matmul %147, %5, %cst_50 {dimension_numbers = #tpu.dot_dimension_numbers<[1], [0], [0], [1], [0, 0, 1, 1], [], []>} : vector<16x32xf32>, vector<32x128xf32>, vector<16x128xf32> -> vector<16x128xf32>
    %c1 = arith.constant 1 : index
    %c0_51 = arith.constant 0 : index
    %173 = vector.load %arg3[%c1, %c0_51] : memref<16x128xf32, #tpu.memory_space<vmem>>, vector<1x128xf32>
    %174 = vector.shape_cast %173 : vector<1x128xf32> to vector<128xf32>
    %175 = vector.shape_cast %174 : vector<128xf32> to vector<1x128xf32>
    %176 = vector.broadcast %175 : vector<1x128xf32> to vector<16x128xf32>
    %177 = arith.addf %172, %176 : vector<16x128xf32>
    %cst_52 = arith.constant dense<0.000000e+00> : vector<16x128xf32>
    %178 = tpu.matmul %171, %5, %cst_52 {dimension_numbers = #tpu.dot_dimension_numbers<[1], [0], [0], [1], [0, 0, 1, 1], [], []>} : vector<16x32xf32>, vector<32x128xf32>, vector<16x128xf32> -> vector<16x128xf32>
    %c1_53 = arith.constant 1 : index
    %c0_54 = arith.constant 0 : index
    %179 = vector.load %arg3[%c1_53, %c0_54] : memref<16x128xf32, #tpu.memory_space<vmem>>, vector<1x128xf32>
    %180 = vector.shape_cast %179 : vector<1x128xf32> to vector<128xf32>
    %181 = vector.shape_cast %180 : vector<128xf32> to vector<1x128xf32>
    %182 = vector.broadcast %181 : vector<1x128xf32> to vector<16x128xf32>
    %183 = arith.addf %178, %182 : vector<16x128xf32>
    %184 = vector.extract_strided_slice %177 {offsets = [0, 0], sizes = [16, 32], strides = [1, 1]} : vector<16x128xf32> to vector<16x32xf32>
    %185 = vector.extract_strided_slice %183 {offsets = [0, 32], sizes = [16, 32], strides = [1, 1]} : vector<16x128xf32> to vector<16x32xf32>
    %186 = vector.extract_strided_slice %183 {offsets = [0, 64], sizes = [16, 32], strides = [1, 1]} : vector<16x128xf32> to vector<16x32xf32>
    %cst_55 = arith.constant 0.353553385 : f32
    %187 = vector.broadcast %cst_55 : f32 to vector<16x32xf32>
    %188 = arith.mulf %184, %187 : vector<16x32xf32>
    %189 = vector.extract_strided_slice %188 {offsets = [0, 0], sizes = [16, 8], strides = [1, 1]} : vector<16x32xf32> to vector<16x8xf32>
    %190 = vector.extract_strided_slice %185 {offsets = [0, 0], sizes = [16, 8], strides = [1, 1]} : vector<16x32xf32> to vector<16x8xf32>
    %cst_56 = arith.constant dense<0.000000e+00> : vector<16x16xf32>
    %191 = tpu.matmul %189, %190, %cst_56 {dimension_numbers = #tpu.dot_dimension_numbers<[1], [1], [0], [0], [0, 0, 1, 0], [], []>} : vector<16x8xf32>, vector<16x8xf32>, vector<16x16xf32> -> vector<16x16xf32>
    %192 = arith.addf %191, %3 : vector<16x16xf32>
    %cst_57 = arith.constant dense<0xFF800000> : vector<16xf32>
    %193 = vector.multi_reduction <maximumf>, %192, %cst_57 [1] : vector<16x16xf32> to vector<16xf32>
    %194 = vector.shape_cast %193 : vector<16xf32> to vector<16x1xf32>
    %195 = vector.broadcast %194 : vector<16x1xf32> to vector<16x16xf32>
    %196 = arith.subf %192, %195 : vector<16x16xf32>
    %197 = math.exp %196 : vector<16x16xf32>
    %cst_58 = arith.constant dense<0.000000e+00> : vector<16xf32>
    %198 = vector.multi_reduction <add>, %197, %cst_58 [1] : vector<16x16xf32> to vector<16xf32>
    %199 = vector.shape_cast %198 : vector<16xf32> to vector<16x1xf32>
    %200 = tpu.reciprocal %199 {approx = true} : vector<16x1xf32> -> vector<16x1xf32>
    %201 = vector.broadcast %200 : vector<16x1xf32> to vector<16x16xf32>
    %202 = arith.mulf %197, %201 : vector<16x16xf32>
    %203 = vector.extract_strided_slice %186 {offsets = [0, 0], sizes = [16, 8], strides = [1, 1]} : vector<16x32xf32> to vector<16x8xf32>
    %cst_59 = arith.constant dense<0.000000e+00> : vector<16x8xf32>
    %204 = tpu.matmul %202, %203, %cst_59 {dimension_numbers = #tpu.dot_dimension_numbers<[1], [0], [0], [1], [0, 0, 1, 1], [], []>} : vector<16x16xf32>, vector<16x8xf32>, vector<16x8xf32> -> vector<16x8xf32>
    %205 = vector.extract_strided_slice %188 {offsets = [0, 8], sizes = [16, 8], strides = [1, 1]} : vector<16x32xf32> to vector<16x8xf32>
    %206 = vector.extract_strided_slice %185 {offsets = [0, 8], sizes = [16, 8], strides = [1, 1]} : vector<16x32xf32> to vector<16x8xf32>
    %cst_60 = arith.constant dense<0.000000e+00> : vector<16x16xf32>
    %207 = tpu.matmul %205, %206, %cst_60 {dimension_numbers = #tpu.dot_dimension_numbers<[1], [1], [0], [0], [0, 0, 1, 0], [], []>} : vector<16x8xf32>, vector<16x8xf32>, vector<16x16xf32> -> vector<16x16xf32>
    %208 = arith.addf %207, %3 : vector<16x16xf32>
    %cst_61 = arith.constant dense<0xFF800000> : vector<16xf32>
    %209 = vector.multi_reduction <maximumf>, %208, %cst_61 [1] : vector<16x16xf32> to vector<16xf32>
    %210 = vector.shape_cast %209 : vector<16xf32> to vector<16x1xf32>
    %211 = vector.broadcast %210 : vector<16x1xf32> to vector<16x16xf32>
    %212 = arith.subf %208, %211 : vector<16x16xf32>
    %213 = math.exp %212 : vector<16x16xf32>
    %cst_62 = arith.constant dense<0.000000e+00> : vector<16xf32>
    %214 = vector.multi_reduction <add>, %213, %cst_62 [1] : vector<16x16xf32> to vector<16xf32>
    %215 = vector.shape_cast %214 : vector<16xf32> to vector<16x1xf32>
    %216 = tpu.reciprocal %215 {approx = true} : vector<16x1xf32> -> vector<16x1xf32>
    %217 = vector.broadcast %216 : vector<16x1xf32> to vector<16x16xf32>
    %218 = arith.mulf %213, %217 : vector<16x16xf32>
    %219 = vector.extract_strided_slice %186 {offsets = [0, 8], sizes = [16, 8], strides = [1, 1]} : vector<16x32xf32> to vector<16x8xf32>
    %cst_63 = arith.constant dense<0.000000e+00> : vector<16x8xf32>
    %220 = tpu.matmul %218, %219, %cst_63 {dimension_numbers = #tpu.dot_dimension_numbers<[1], [0], [0], [1], [0, 0, 1, 1], [], []>} : vector<16x16xf32>, vector<16x8xf32>, vector<16x8xf32> -> vector<16x8xf32>
    %221 = vector.extract_strided_slice %188 {offsets = [0, 16], sizes = [16, 8], strides = [1, 1]} : vector<16x32xf32> to vector<16x8xf32>
    %222 = vector.extract_strided_slice %185 {offsets = [0, 16], sizes = [16, 8], strides = [1, 1]} : vector<16x32xf32> to vector<16x8xf32>
    %cst_64 = arith.constant dense<0.000000e+00> : vector<16x16xf32>
    %223 = tpu.matmul %221, %222, %cst_64 {dimension_numbers = #tpu.dot_dimension_numbers<[1], [1], [0], [0], [0, 0, 1, 0], [], []>} : vector<16x8xf32>, vector<16x8xf32>, vector<16x16xf32> -> vector<16x16xf32>
    %224 = arith.addf %223, %3 : vector<16x16xf32>
    %cst_65 = arith.constant dense<0xFF800000> : vector<16xf32>
    %225 = vector.multi_reduction <maximumf>, %224, %cst_65 [1] : vector<16x16xf32> to vector<16xf32>
    %226 = vector.shape_cast %225 : vector<16xf32> to vector<16x1xf32>
    %227 = vector.broadcast %226 : vector<16x1xf32> to vector<16x16xf32>
    %228 = arith.subf %224, %227 : vector<16x16xf32>
    %229 = math.exp %228 : vector<16x16xf32>
    %cst_66 = arith.constant dense<0.000000e+00> : vector<16xf32>
    %230 = vector.multi_reduction <add>, %229, %cst_66 [1] : vector<16x16xf32> to vector<16xf32>
    %231 = vector.shape_cast %230 : vector<16xf32> to vector<16x1xf32>
    %232 = tpu.reciprocal %231 {approx = true} : vector<16x1xf32> -> vector<16x1xf32>
    %233 = vector.broadcast %232 : vector<16x1xf32> to vector<16x16xf32>
    %234 = arith.mulf %229, %233 : vector<16x16xf32>
    %235 = vector.extract_strided_slice %186 {offsets = [0, 16], sizes = [16, 8], strides = [1, 1]} : vector<16x32xf32> to vector<16x8xf32>
    %cst_67 = arith.constant dense<0.000000e+00> : vector<16x8xf32>
    %236 = tpu.matmul %234, %235, %cst_67 {dimension_numbers = #tpu.dot_dimension_numbers<[1], [0], [0], [1], [0, 0, 1, 1], [], []>} : vector<16x16xf32>, vector<16x8xf32>, vector<16x8xf32> -> vector<16x8xf32>
    %237 = vector.extract_strided_slice %188 {offsets = [0, 24], sizes = [16, 8], strides = [1, 1]} : vector<16x32xf32> to vector<16x8xf32>
    %238 = vector.extract_strided_slice %185 {offsets = [0, 24], sizes = [16, 8], strides = [1, 1]} : vector<16x32xf32> to vector<16x8xf32>
    %cst_68 = arith.constant dense<0.000000e+00> : vector<16x16xf32>
    %239 = tpu.matmul %237, %238, %cst_68 {dimension_numbers = #tpu.dot_dimension_numbers<[1], [1], [0], [0], [0, 0, 1, 0], [], []>} : vector<16x8xf32>, vector<16x8xf32>, vector<16x16xf32> -> vector<16x16xf32>
    %240 = arith.addf %239, %3 : vector<16x16xf32>
    %cst_69 = arith.constant dense<0xFF800000> : vector<16xf32>
    %241 = vector.multi_reduction <maximumf>, %240, %cst_69 [1] : vector<16x16xf32> to vector<16xf32>
    %242 = vector.shape_cast %241 : vector<16xf32> to vector<16x1xf32>
    %243 = vector.broadcast %242 : vector<16x1xf32> to vector<16x16xf32>
    %244 = arith.subf %240, %243 : vector<16x16xf32>
    %245 = math.exp %244 : vector<16x16xf32>
    %cst_70 = arith.constant dense<0.000000e+00> : vector<16xf32>
    %246 = vector.multi_reduction <add>, %245, %cst_70 [1] : vector<16x16xf32> to vector<16xf32>
    %247 = vector.shape_cast %246 : vector<16xf32> to vector<16x1xf32>
    %248 = tpu.reciprocal %247 {approx = true} : vector<16x1xf32> -> vector<16x1xf32>
    %249 = vector.broadcast %248 : vector<16x1xf32> to vector<16x16xf32>
    %250 = arith.mulf %245, %249 : vector<16x16xf32>
    %251 = vector.extract_strided_slice %186 {offsets = [0, 24], sizes = [16, 8], strides = [1, 1]} : vector<16x32xf32> to vector<16x8xf32>
    %cst_71 = arith.constant dense<0.000000e+00> : vector<16x8xf32>
    %252 = tpu.matmul %250, %251, %cst_71 {dimension_numbers = #tpu.dot_dimension_numbers<[1], [0], [0], [1], [0, 0, 1, 1], [], []>} : vector<16x16xf32>, vector<16x8xf32>, vector<16x8xf32> -> vector<16x8xf32>
    %253 = tpu.concatenate %204, %220, %236, %252 in 1 : vector<16x8xf32>, vector<16x8xf32>, vector<16x8xf32>, vector<16x8xf32> -> vector<16x32xf32>
    %cst_72 = arith.constant dense<0.000000e+00> : vector<16x128xf32>
    %254 = tpu.matmul %253, %6, %cst_72 {dimension_numbers = #tpu.dot_dimension_numbers<[1], [0], [0], [1], [0, 0, 1, 1], [], []>} : vector<16x32xf32>, vector<32x128xf32>, vector<16x128xf32> -> vector<16x128xf32>
    %255 = vector.extract_strided_slice %254 {offsets = [0, 96], sizes = [16, 32], strides = [1, 1]} : vector<16x128xf32> to vector<16x32xf32>
    %256 = arith.addf %119, %255 : vector<16x32xf32>
    %c3 = arith.constant 3 : index
    %c0_73 = arith.constant 0 : index
    %257 = vector.load %arg3[%c3, %c0_73] : memref<16x128xf32, #tpu.memory_space<vmem>>, vector<1x32xf32>
    %258 = vector.shape_cast %257 : vector<1x32xf32> to vector<32xf32>
    %259 = vector.shape_cast %258 : vector<32xf32> to vector<1x32xf32>
    %260 = vector.broadcast %259 : vector<1x32xf32> to vector<16x32xf32>
    %261 = arith.addf %256, %260 : vector<16x32xf32>
    %c10 = arith.constant 10 : index
    %c0_74 = arith.constant 0 : index
    %262 = vector.load %arg3[%c10, %c0_74] : memref<16x128xf32, #tpu.memory_space<vmem>>, vector<1x32xf32>
    %263 = vector.shape_cast %262 : vector<1x32xf32> to vector<32xf32>
    %c11 = arith.constant 11 : index
    %c0_75 = arith.constant 0 : index
    %264 = vector.load %arg3[%c11, %c0_75] : memref<16x128xf32, #tpu.memory_space<vmem>>, vector<1x32xf32>
    %265 = vector.shape_cast %264 : vector<1x32xf32> to vector<32xf32>
    %cst_76 = arith.constant dense<0.000000e+00> : vector<16xf32>
    %266 = vector.multi_reduction <add>, %261, %cst_76 [1] : vector<16x32xf32> to vector<16xf32>
    %267 = vector.shape_cast %266 : vector<16xf32> to vector<16x1xf32>
    %cst_77 = arith.constant 3.200000e+01 : f32
    %268 = vector.broadcast %cst_77 : f32 to vector<16x1xf32>
    %269 = arith.divf %267, %268 : vector<16x1xf32>
    %270 = vector.broadcast %269 : vector<16x1xf32> to vector<16x32xf32>
    %271 = arith.subf %261, %270 : vector<16x32xf32>
    %272 = arith.mulf %271, %271 : vector<16x32xf32>
    %cst_78 = arith.constant dense<0.000000e+00> : vector<16xf32>
    %273 = vector.multi_reduction <add>, %272, %cst_78 [1] : vector<16x32xf32> to vector<16xf32>
    %274 = vector.shape_cast %273 : vector<16xf32> to vector<16x1xf32>
    %cst_79 = arith.constant 3.200000e+01 : f32
    %275 = vector.broadcast %cst_79 : f32 to vector<16x1xf32>
    %276 = arith.divf %274, %275 : vector<16x1xf32>
    %277 = vector.broadcast %269 : vector<16x1xf32> to vector<16x32xf32>
    %278 = arith.subf %261, %277 : vector<16x32xf32>
    %cst_80 = arith.constant 9.99999974E-6 : f32
    %279 = vector.broadcast %cst_80 : f32 to vector<16x1xf32>
    %280 = arith.addf %276, %279 : vector<16x1xf32>
    %281 = math.rsqrt %280 : vector<16x1xf32>
    %282 = vector.broadcast %281 : vector<16x1xf32> to vector<16x32xf32>
    %283 = arith.mulf %278, %282 : vector<16x32xf32>
    %284 = vector.shape_cast %263 : vector<32xf32> to vector<1x32xf32>
    %285 = vector.broadcast %284 : vector<1x32xf32> to vector<16x32xf32>
    %286 = arith.mulf %283, %285 : vector<16x32xf32>
    %287 = vector.shape_cast %265 : vector<32xf32> to vector<1x32xf32>
    %288 = vector.broadcast %287 : vector<1x32xf32> to vector<16x32xf32>
    %289 = arith.addf %286, %288 : vector<16x32xf32>
    %cst_81 = arith.constant dense<0.000000e+00> : vector<16x128xf32>
    %290 = tpu.matmul %289, %6, %cst_81 {dimension_numbers = #tpu.dot_dimension_numbers<[1], [0], [0], [1], [0, 0, 1, 1], [], []>} : vector<16x32xf32>, vector<32x128xf32>, vector<16x128xf32> -> vector<16x128xf32>
    %291 = vector.extract_strided_slice %290 {offsets = [0, 0], sizes = [16, 64], strides = [1, 1]} : vector<16x128xf32> to vector<16x64xf32>
    %c4 = arith.constant 4 : index
    %c0_82 = arith.constant 0 : index
    %292 = vector.load %arg3[%c4, %c0_82] : memref<16x128xf32, #tpu.memory_space<vmem>>, vector<1x64xf32>
    %293 = vector.shape_cast %292 : vector<1x64xf32> to vector<64xf32>
    %294 = vector.shape_cast %293 : vector<64xf32> to vector<1x64xf32>
    %295 = vector.broadcast %294 : vector<1x64xf32> to vector<16x64xf32>
    %296 = arith.addf %291, %295 : vector<16x64xf32>
    %cst_83 = arith.constant 0.000000e+00 : f32
    %297 = vector.broadcast %cst_83 : f32 to vector<16x64xf32>
    %298 = arith.maximumf %296, %297 : vector<16x64xf32>
    %cst_84 = arith.constant dense<0.000000e+00> : vector<16x128xf32>
    %299 = tpu.matmul %298, %7, %cst_84 {dimension_numbers = #tpu.dot_dimension_numbers<[1], [0], [0], [1], [0, 0, 1, 1], [], []>} : vector<16x64xf32>, vector<64x128xf32>, vector<16x128xf32> -> vector<16x128xf32>
    %300 = vector.extract_strided_slice %299 {offsets = [0, 0], sizes = [16, 32], strides = [1, 1]} : vector<16x128xf32> to vector<16x32xf32>
    %301 = arith.addf %261, %300 : vector<16x32xf32>
    %c5 = arith.constant 5 : index
    %c0_85 = arith.constant 0 : index
    %302 = vector.load %arg3[%c5, %c0_85] : memref<16x128xf32, #tpu.memory_space<vmem>>, vector<1x32xf32>
    %303 = vector.shape_cast %302 : vector<1x32xf32> to vector<32xf32>
    %304 = vector.shape_cast %303 : vector<32xf32> to vector<1x32xf32>
    %305 = vector.broadcast %304 : vector<1x32xf32> to vector<16x32xf32>
    %306 = arith.addf %301, %305 : vector<16x32xf32>
    %c0_86 = arith.constant 0 : index
    %c0_87 = arith.constant 0 : index
    %307 = vector.load %arg4[%c0_86, %c0_87] : memref<16x32xf32, #tpu.memory_space<vmem>>, vector<16x32xf32>
    tpu.vector_store %arg4[%c0_86, %c0_87], %306 {strides = array<i32>} : memref<16x32xf32, #tpu.memory_space<vmem>>, vector<16x32xf32>,
    return
  }
  func.func @transform_0(%arg0: i32) -> (i32, i32) {
    %c0_i32 = arith.constant 0 : i32
    %c0_i32_0 = arith.constant 0 : i32
    %c0_i32_1 = arith.constant 0 : i32
    return %c0_i32, %c0_i32_0 : i32, i32
  }
  func.func @transform_1(%arg0: i32) -> (i32, i32) {
    %c0_i32 = arith.constant 0 : i32
    %c0_i32_0 = arith.constant 0 : i32
    %c0_i32_1 = arith.constant 0 : i32
    return %c0_i32, %c0_i32_0 : i32, i32
  }
  func.func @transform_2(%arg0: i32) -> (i32, i32) {
    %c0_i32 = arith.constant 0 : i32
    %c0_i32_0 = arith.constant 0 : i32
    %c0_i32_1 = arith.constant 0 : i32
    return %c0_i32, %c0_i32_0 : i32, i32
  }
  func.func @transform_3(%arg0: i32) -> (i32, i32) {
    %c0_i32 = arith.constant 0 : i32
    %c0_i32_0 = arith.constant 0 : i32
    %c0_i32_1 = arith.constant 0 : i32
    return %c0_i32, %c0_i32_0 : i32, i32
  }
}

</mosaic_0001>

<bundles_post_ra>
// kernel: decoder_layer.1
= control target key start
LH: loop header
LB: loop body
LE: loop exit
PB: predicated region body
PF: predicated region fallthrough
CT: control target
= control target key end

     0   :  { %vm45_vm0 = vcmask 261120   ;;  %s3730_s0 = inlined_call_operand.vmem [shape: f32[64,32], index: 0, kind: input, shape index: {}]   ;;  %s3731_s1 = inlined_call_operand.vmem [shape: f32[160,128], index: 1, kind: input, shape index: {}]   ;;  %s3732_s2 = inlined_call_operand.vmem [shape: f32[16,128], index: 2, kind: input, shape index: {}]   ;;  %s3733_s3 = inlined_call_operand.hbm [shape: f32[16,32], index: 3, kind: output, shape index: {}]  }
   0x1   :  { %v3276_v0 = vld [vmem:[%s3730_s0 + $0x10] sm:$0xff]  ;;  %v3281_v1 = vld [vmem:[%s3730_s0 + $0x18] sm:$0xff] }
   0x2   :  { %8 = vsyncpa [#allocation3], 0  ;;  %v46_v2 = vsel %vm45_vm0, %v3276_v0, 0.0  ;;  %v49_v3 = vsel %vm45_vm0, %v3281_v1, 0.0  ;;  %v23_v14 = vld [vmem:[%s3731_s1] sm:$0xff]  ;;  %v24_v15 = vld [vmem:[%s3731_s1 + $0x8] sm:$0xff] }
   0x3   :  { %47 = vadd.xlane.f32.xlu0 %v46_v2  ;;  %v25_v16 = vld [vmem:[%s3731_s1 + $0x10] sm:$0xff]  ;;  %v2891_v17 = vpack.c.bf16 %v24_v15, %v23_v14  ;;  %v26_v18 = vld [vmem:[%s3731_s1 + $0x18] sm:$0xff]  ;;  %v2510_v27 = vld [vmem:[%s3732_s2 + $0x6] ss:$0 sm:$0xff]  ;;  %vm179_vm1 = vcmask 64512   ;;  %s3236_s30 = smov 88  }
   0x4   :  { %v2895_v19 = vpack.c.bf16 %v26_v18, %v25_v16  ;;  %v2511_v29 = vld [vmem:[%s3732_s2 + $0x7] ss:$0 sm:$0xff]  ;;  %v2512_v36 = vld [vmem:[%s3732_s2] ss:$0 sm:$0xff]  ;;  %s3237_s4 = smov 96   ;;  %s3238_s5 = smov 120   ;;  %vm3332_vm2 = vmpackc.low %vm179_vm1, %vm179_vm1 }
   0x5   :  { %2892 = vmatprep.subr.bf16.mxu1 %v2891_v17  ;;  %v3351_v55 = vld [vmem:[%s3730_s0 + $0x28] sm:$0xff]  ;;  %v3356_v56 = vld [vmem:[%s3730_s0 + $0x20] sm:$0xff]  ;;  %vm265_vm3 = vcmask 130048   ;;  %s3239_s10 = smov 56   ;;  %s3240_s11 = smov 64   ;;  %vm1003_vm4 = vcmask 195584  }
   0x6   :  { %2894 = vmatpush3.bf16.msra.mxu1 %v2891_v17  ;;  %s3241_s12 = smov 80   ;;  %s3242_s13 = smov 112   ;;  %vm2401_vm5 = vcmask 523264  }
   0x7   :  { %50 = vadd.xlane.f32.xlu0 %v49_v3  ;;  %2896 = vmatprep.subr.bf16.mxu1 %v2895_v19  ;;  %s3243_s14 = smov 48   ;;  %s3244_s15 = smov 104  }
   0x8   :  { %s3245_s16 = smov 72   ;;  %s3246_s17 = smov 40  }
   0x9   :  { %s3247_s18 = smov 8   ;;  %s3248_s19 = smov 16  }
   0xa   :  { %2898 = vmatpush3.bf16.msra.mxu1 %v2895_v19  ;;  %s3249_s28 = smov 24  }
  0x90   :  { %v48_v4 = vpop.xlane.xlu0 %47 }
  0x91   :  { %v53_v5 = vmul.f32 0.03125, %v48_v4 }
  0x93   :  { %v55_v6 = vsub.f32 %v3276_v0, %v53_v5 }
  0x94   :  { %v51_v7 = vpop.xlane.xlu0 %50 }
  0x95   :  { %v54_v8 = vmul.f32 0.03125, %v51_v7  ;;  %v57_v9 = vmul.f32 %v55_v6, %v55_v6 }
  0x97   :  { %v56_v10 = vsub.f32 %v3281_v1, %v54_v8  ;;  %v59_v11 = vsel %vm45_vm0, %v57_v9, 0.0 }
  0x98   :  { %60 = vadd.xlane.f32.xlu1 %v59_v11 }
  0x99   :  { %v58_v12 = vmul.f32 %v56_v10, %v56_v10 }
  0x9b   :  { %v62_v13 = vsel %vm45_vm0, %v58_v12, 0.0 }
  0x9c   :  { %63 = vadd.xlane.f32.xlu1 %v62_v13 }
 0x125   :  { %v61_v20 = vpop.xlane.xlu1 %60 }
 0x126   :  { %v65_v21 = vmul.f32 0.03125, %v61_v20 }
 0x128   :  { %v67_v22 = vadd.f32 1e-05, %v65_v21 }
 0x129   :  { %v64_v23 = vpop.xlane.xlu1 %63 }
 0x12a   :  { %3132 = vrsqrt.f32 %v67_v22  ;;  %v66_v24 = vmul.f32 0.03125, %v64_v23 }
 0x12c   :  { %v68_v25 = vadd.f32 1e-05, %v66_v24 }
 0x12e   :  { %3134 = vrsqrt.f32 %v68_v25 }
 0x134   :  { %v3133_v26 = vpop.eup %3132 }
 0x135   :  { %v71_v28 = vmul.f32 %v3133_v26, %v55_v6 }
 0x137   :  { %v77_v30 = vmul.f32 %v2510_v27, %v71_v28 }
 0x138   :  { %v3135_v31 = vpop.eup %3134 }
 0x139   :  { %v72_v32 = vmul.f32 %v3135_v31, %v56_v10  ;;  %v83_v33 = vadd.f32 %v2511_v29, %v77_v30 }
 0x13b   :  { %v78_v34 = vmul.f32 %v2510_v27, %v72_v32  ;;  %2702 = vmatprep.mubr.msk.f32.mxu1 %vm45_vm0, %v83_v33 }
 0x13d   :  { %v84_v35 = vadd.f32 %v2511_v29, %v78_v34 }
 0x13f   :  { %2703 = vmatmul.mubr.msk.f32.vlgmr.msra.gmra.mrb[0].mxu1 %vm45_vm0, %v84_v35 }
 0x212   :  { %v2704_v37 = vpop.f32.mrb[0].mxu1 }
 0x213   :  { %v168_v38 = vadd.f32 %v2704_v37, %v2512_v36  ;;  %v162_v39 = vpop.f32.mrb[1].mxu1 }
 0x214   :  { %v163_v40 = vadd.f32 %v2512_v36, %v162_v39 }
 0x215   :  { %v3326_v43 = vmul.f32 0.35355338, %v168_v38 }
 0x216   :  { %v3314_v41 = vpack.i.bf16 %v168_v38, %v163_v40  ;;  %v3316_v42 = vmul.f32 0.35355338, %v163_v40 }
 0x218   :  { %3058 = vrot.lane.b32.xlu1 %v3314_v41, %s3236_s30  ;;  %3053 = vrot.lane.b32.xlu0 %v3314_v41, %s3237_s4 }
 0x219   :  { %2709 = vmatprep.mubr.msk.f32.mxu1 %vm179_vm1, %v3316_v42 }
 0x21c   :  { %375 = vrot.lane.b32.xlu1 %v3316_v42, %s3238_s5 }
 0x220   :  { %377 = vrot.lane.b32.xlu1 %v3326_v43, %s3238_s5 }
 0x28a   :  { %v3059_v44 = vpop.permute.xlu1 %3058  ;;  %v3054_v45 = vpop.permute.xlu0 %3053 }
 0x28b   :  { %v3061_v46 = vunpack.i.h.bf16 %v3059_v44  ;;  %v3060_v47 = vunpack.i.l.bf16 %v3059_v44  ;;  %v3056_v48 = vunpack.i.h.bf16 %v3054_v45  ;;  %v3055_v49 = vunpack.i.l.bf16 %v3054_v45 }
 0x28d   :  { %v2899_v51 = vpack.c.bf16 %v3056_v48, %v3055_v49  ;;  %v2909_v52 = vpack.c.bf16 %v3061_v46, %v3060_v47 }
 0x28e   :  { %v376_v53 = vpop.permute.xlu1 %375 }
 0x28f   :  { %2901 = vmatprep.subr.msk.bf16.mxu1 %vm3332_vm2, %v2899_v51 }
 0x290   :  { %2904 = vmatpush3.bf16.xpose.msk.msra.mxu1 %vm3332_vm2, %v2899_v51 }
 0x291   :  { %2911 = vmatprep.subr.msk.bf16.mxu1 %vm3332_vm2, %v2909_v52 }
 0x292   :  { %v378_v54 = vpop.permute.xlu1 %377 }
 0x297   :  { %2710 = vmatmul.mubr.msk.f32.vlgmr.msra.gmra.mrb[2].mxu1 %vm179_vm1, %v3326_v43 }
 0x298   :  { %2914 = vmatpush3.bf16.xpose.msk.msra.mxu1 %vm3332_vm2, %v2909_v52  ;;  %2723 = vmatprep.mubr.msk.f32.mxu1 %vm179_vm1, %v376_v53 }
 0x29f   :  { %2724 = vmatmul.mubr.msk.f32.vlgmr.msra.gmra.mrb[4].mxu1 %vm179_vm1, %v378_v54 }
 0x36a   :  { %v2711_v57 = vpop.f32.mrb[2].mxu1 }
 0x36b   :  { %v262_v58 = vadd.f32 %v2711_v57, %v3351_v55  ;;  %v256_v59 = vpop.f32.mrb[3].mxu1 }
 0x36c   :  { %v257_v60 = vadd.f32 %v256_v59, %v3356_v56 }
 0x36d   :  { %v269_v61 = vsel %vm265_vm3, %v262_v58, -inf }
 0x36e   :  { %270 = vmax.xlane.f32.xlu1 %v269_v61  ;;  %v266_v62 = vsel %vm265_vm3, %v257_v60, -inf }
 0x36f   :  { %267 = vmax.xlane.f32.xlu0 %v266_v62 }
 0x372   :  { %v2725_v63 = vpop.f32.mrb[4].mxu1 }
 0x373   :  { %v457_v2 = vpop.f32.mrb[5].mxu1  ;;  %v463_v4 = vadd.f32 %v2725_v63, %v3351_v55 }
 0x374   :  { %v458_v3 = vadd.f32 %v457_v2, %v3356_v56 }
 0x375   :  { %v469_v6 = vsel %vm265_vm3, %v463_v4, -inf }
 0x376   :  { %v466_v5 = vsel %vm265_vm3, %v458_v3, -inf }
 0x377   :  { %467 = vmax.xlane.f32.xlu0 %v466_v5 }
 0x37b   :  { %470 = vmax.xlane.f32.xlu0 %v469_v6 }
 0x3fb   :  { %v271_v7 = vpop.xlane.xlu1 %270 }
 0x3fc   :  { %v273_v8 = vsub.f32 %v262_v58, %v271_v7  ;;  %v268_v9 = vpop.xlane.xlu0 %267 }
 0x3fd   :  { %v272_v10 = vsub.f32 %v257_v60, %v268_v9 }
 0x3fe   :  { %v276_v11 = vmul.f32 1.442695, %v273_v8 }
 0x3ff   :  { %v274_v12 = vmul.f32 1.442695, %v272_v10 }
 0x400   :  { %3136 = vpow2.f32 %v276_v11 }
 0x401   :  { %3138 = vpow2.f32 %v274_v12 }
 0x404   :  { %v468_v13 = vpop.xlane.xlu0 %467 }
 0x405   :  { %v472_v14 = vsub.f32 %v458_v3, %v468_v13 }
 0x407   :  { %v474_v15 = vmul.f32 1.442695, %v472_v14 }
 0x408   :  { %v471_v16 = vpop.xlane.xlu0 %470 }
 0x409   :  { %3140 = vpow2.f32 %v474_v15  ;;  %v473_v17 = vsub.f32 %v463_v4, %v471_v16 }
 0x40a   :  { %v3137_v18 = vpop.eup %3136 }
 0x40b   :  { %v3139_v19 = vpop.eup %3138  ;;  %v476_v20 = vmul.f32 1.442695, %v473_v17  ;;  %v281_v21 = vsel %vm265_vm3, %v3137_v18, 0.0 }
 0x40c   :  { %282 = vadd.xlane.f32.xlu1 %v281_v21  ;;  %v278_v22 = vsel %vm265_vm3, %v3139_v19, 0.0 }
 0x40d   :  { %3142 = vpow2.f32 %v476_v20  ;;  %279 = vadd.xlane.f32.xlu0 %v278_v22 }
 0x413   :  { %v3141_v23 = vpop.eup %3140 }
 0x414   :  { %v478_v24 = vsel %vm265_vm3, %v3141_v23, 0.0 }
 0x415   :  { %479 = vadd.xlane.f32.xlu0 %v478_v24 }
 0x417   :  { %v3143_v25 = vpop.eup %3142 }
 0x418   :  { %v481_v26 = vsel %vm265_vm3, %v3143_v25, 0.0 }
 0x419   :  { %482 = vadd.xlane.f32.xlu1 %v481_v26 }
 0x42a   :  { %3068 = vrot.lane.b32.xlu1 %v3314_v41, %s3239_s10 }
 0x42b   :  { %3063 = vrot.lane.b32.xlu0 %v3314_v41, %s3240_s11 }
 0x42e   :  { %3073 = vrot.lane.b32.xlu1 %v3314_v41, %s3241_s12 }
 0x42f   :  { %577 = vrot.lane.b32.xlu0 %v3326_v43, %s3242_s13 }
 0x432   :  { %575 = vrot.lane.b32.xlu1 %v3316_v42, %s3242_s13 }
 0x499   :  { %v283_v28 = vpop.xlane.xlu1 %282 }
 0x49a   :  { %v280_v27 = vpop.xlane.xlu0 %279 }
 0x49b   :  { %3144 = vrcp.f32 %v280_v27 }
 0x49c   :  { %3146 = vrcp.f32 %v283_v28 }
 0x4a2   :  { %v480_v29 = vpop.xlane.xlu0 %479 }
 0x4a3   :  { %3148 = vrcp.f32 %v480_v29 }
 0x4a5   :  { %v3145_v30 = vpop.eup %3144 }
 0x4a6   :  { %v483_v31 = vpop.xlane.xlu1 %482  ;;  %v3064_v32 = vpop.permute.xlu0 %3063  ;;  %v286_v33 = vmul.f32 %v3145_v30, %v3139_v19 }
 0x4a7   :  { %3150 = vrcp.f32 %v483_v31  ;;  %v3066_v34 = vunpack.i.h.bf16 %v3064_v32  ;;  %v3065_v35 = vunpack.i.l.bf16 %v3064_v32  ;;  %v3147_v37 = vpop.eup %3146 }
 0x4a8   :  { %2716 = vmatprep.mubr.msk.f32.mxu0 %vm265_vm3, %v286_v33  ;;  %v287_v46 = vmul.f32 %v3147_v37, %v3137_v18 }
 0x4a9   :  { %v2905_v36 = vpack.c.bf16 %v3066_v34, %v3065_v35 }
 0x4aa   :  { %v3069_v38 = vpop.permute.xlu1 %3068  ;;  %v578_v58 = vpop.permute.xlu0 %577 }
 0x4ab   :  { %v3071_v39 = vunpack.i.h.bf16 %v3069_v38  ;;  %v3070_v40 = vunpack.i.l.bf16 %v3069_v38  ;;  %2906 = vmatprep.subr.bf16.mxu0 %v2905_v36 }
 0x4ac   :  { %2908 = vmatpush3.bf16.msra.mxu0 %v2905_v36 }
 0x4ad   :  { %v3149_v44 = vpop.eup %3148  ;;  %v2915_v45 = vpack.c.bf16 %v3071_v39, %v3070_v40 }
 0x4ae   :  { %v3074_v47 = vpop.permute.xlu1 %3073  ;;  %v486_v48 = vmul.f32 %v3149_v44, %v3141_v23 }
 0x4af   :  { %v3076_v49 = vunpack.i.h.bf16 %v3074_v47  ;;  %v3075_v51 = vunpack.i.l.bf16 %v3074_v47  ;;  %2717 = vmatmul.mubr.msk.f32.vlgmr.msra.gmra.mrb[0].mxu0 %vm265_vm3, %v287_v46  ;;  %2916 = vmatprep.subr.bf16.mxu0 %v2915_v45 }
 0x4b0   :  { %2918 = vmatpush3.bf16.msra.mxu0 %v2915_v45  ;;  %2730 = vmatprep.mubr.msk.f32.mxu0 %vm265_vm3, %v486_v48 }
 0x4b1   :  { %v3151_v52 = vpop.eup %3150  ;;  %v2919_v53 = vpack.c.bf16 %v3076_v49, %v3075_v51 }
 0x4b2   :  { %v487_v54 = vmul.f32 %v3151_v52, %v3143_v25  ;;  %v576_v57 = vpop.permute.xlu1 %575 }
 0x4b3   :  { %2921 = vmatprep.subr.msk.bf16.mxu0 %vm3332_vm2, %v2919_v53 }
 0x4b4   :  { %2731 = vmatmul.mubr.msk.f32.vlgmr.msra.gmra.mrb[2].mxu0 %vm265_vm3, %v487_v54 }
 0x4b5   :  { %2737 = vmatprep.mubr.msk.f32.mxu0 %vm179_vm1, %v576_v57 }
 0x4b9   :  { %2924 = vmatpush3.bf16.xpose.msk.msra.mxu0 %vm3332_vm2, %v2919_v53 }
 0x4c0   :  { %2738 = vmatmul.mubr.msk.f32.vlgmr.msra.gmra.mrb[4].mxu0 %vm179_vm1, %v578_v58 }
 0x582   :  { %v3390_v59 = vpop.f32.mrb[0].mxu0 }
 0x583   :  { %v3392_v60 = vpop.f32.mrb[1].mxu0 }
 0x587   :  { %v3394_v61 = vpop.f32.mrb[2].mxu0 }
 0x588   :  { %v3396_v62 = vpop.f32.mrb[3].mxu0 }
 0x593   :  { %v2739_v63 = vpop.f32.mrb[4].mxu0 }
 0x594   :  { %v663_v2 = vadd.f32 %v2739_v63, %v3351_v55  ;;  %v657_v3 = vpop.f32.mrb[5].mxu0 }
 0x595   :  { %v658_v4 = vadd.f32 %v657_v3, %v3356_v56  ;;  %v31_v3 = vld [vmem:[%s3731_s1 + $0x40] sm:$0xff] }
 0x596   :  { %v669_v5 = vsel %vm265_vm3, %v663_v2, -inf }
 0x597   :  { %670 = vmax.xlane.f32.xlu0 %v669_v5  ;;  %v666_v6 = vsel %vm265_vm3, %v658_v4, -inf }
 0x598   :  { %667 = vmax.xlane.f32.xlu1 %v666_v6  ;;  %v34_v6 = vld [vmem:[%s3731_s1 + $0x58] sm:$0xff] }
 0x5a9   :  { %3078 = vrot.lane.b32.xlu1 %v3314_v41, %s3243_s14 }
 0x5ad   :  { %775 = vrot.lane.b32.xlu1 %v3316_v42, %s3244_s15 }
 0x5b1   :  { %777 = vrot.lane.b32.xlu1 %v3326_v43, %s3244_s15 }
 0x624   :  { %v671_v7 = vpop.xlane.xlu0 %670 }
 0x625   :  { %v673_v8 = vsub.f32 %v663_v2, %v671_v7  ;;  %v668_v9 = vpop.xlane.xlu1 %667 }
 0x626   :  { %v672_v10 = vsub.f32 %v658_v4, %v668_v9  ;;  %v33_v4 = vld [vmem:[%s3731_s1 + $0x50] sm:$0xff] }
 0x627   :  { %v676_v11 = vmul.f32 1.442695, %v673_v8  ;;  %v3450_v7 = vpack.c.bf16 %v34_v6, %v33_v4 }
 0x628   :  { %v674_v12 = vmul.f32 1.442695, %v672_v10 }
 0x629   :  { %3152 = vpow2.f32 %v676_v11  ;;  %v3079_v13 = vpop.permute.xlu1 %3078 }
 0x62a   :  { %v3081_v14 = vunpack.i.h.bf16 %v3079_v13  ;;  %v3080_v15 = vunpack.i.l.bf16 %v3079_v13  ;;  %3154 = vpow2.f32 %v674_v12 }
 0x62c   :  { %v2925_v16 = vpack.c.bf16 %v3081_v14, %v3080_v15 }
 0x62d   :  { %v776_v29 = vpop.permute.xlu1 %775 }
 0x62e   :  { %2926 = vmatprep.subr.bf16.mxu1 %v2925_v16 }
 0x62f   :  { %2928 = vmatpush3.bf16.msra.mxu1 %v2925_v16 }
 0x631   :  { %v778_v30 = vpop.permute.xlu1 %777 }
 0x633   :  { %v3153_v17 = vpop.eup %3152 }
 0x634   :  { %v681_v42 = vsel %vm265_vm3, %v3153_v17, 0.0  ;;  %v3155_v18 = vpop.eup %3154 }
 0x635   :  { %682 = vadd.xlane.f32.xlu0 %v681_v42  ;;  %v678_v43 = vsel %vm265_vm3, %v3155_v18, 0.0 }
 0x639   :  { %679 = vadd.xlane.f32.xlu0 %v678_v43 }
 0x64f   :  { %3083 = vrot.lane.b32.xlu0 %v3314_v41, %s3245_s16 }
 0x6c2   :  { %v683_v19 = vpop.xlane.xlu0 %682 }
 0x6c3   :  { %3156 = vrcp.f32 %v683_v19 }
 0x6c6   :  { %v680_v20 = vpop.xlane.xlu0 %679 }
 0x6c7   :  { %3158 = vrcp.f32 %v680_v20 }
 0x6ca   :  { %v3084_v21 = vpop.permute.xlu0 %3083 }
 0x6cb   :  { %v3086_v22 = vunpack.i.h.bf16 %v3084_v21  ;;  %v3085_v23 = vunpack.i.l.bf16 %v3084_v21 }
 0x6cd   :  { %v2929_v24 = vpack.c.bf16 %v3086_v22, %v3085_v23  ;;  %v3157_v25 = vpop.eup %3156  ;;  %v16_v22 = vld [vmem:[%s3730_s0 + $0x8] sm:$0xff] }
 0x6ce   :  { %v687_v28 = vmul.f32 %v3157_v25, %v3153_v17  ;;  %v1147_v23 = vsel %vm45_vm0, %v16_v22, 0.0  ;;  %v2541_v25 = vld [vmem:[%s3732_s2 + $0x2] ss:$0 sm:$0xff] }
 0x6cf   :  { %2931 = vmatprep.subr.msk.bf16.mxu1 %vm3332_vm2, %v2929_v24 }
 0x6d1   :  { %v3159_v26 = vpop.eup %3158 }
 0x6d2   :  { %v686_v27 = vmul.f32 %v3159_v26, %v3155_v18 }
 0x6d4   :  { %2744 = vmatprep.mubr.msk.f32.mxu1 %vm265_vm3, %v686_v27 }
 0x6d5   :  { %2745 = vmatmul.mubr.msk.f32.vlgmr.msra.gmra.mrb[6].mxu1 %vm265_vm3, %v687_v28 }
 0x6d6   :  { %2934 = vmatpush3.bf16.xpose.msk.msra.mxu1 %vm3332_vm2, %v2929_v24  ;;  %2751 = vmatprep.mubr.msk.f32.mxu1 %vm179_vm1, %v776_v29 }
 0x6dd   :  { %2752 = vmatmul.mubr.msk.f32.vlgmr.msra.gmra.mrb[8].mxu1 %vm179_vm1, %v778_v30 }
 0x7a8   :  { %v2746_v31 = vpop.f32.mrb[6].mxu1 }
 0x7a9   :  { %v766_v32 = vpop.f32.mrb[7].mxu1 }
 0x7b0   :  { %v2753_v33 = vpop.f32.mrb[8].mxu1 }
 0x7b1   :  { %v863_v34 = vadd.f32 %v2753_v33, %v3351_v55  ;;  %v857_v35 = vpop.f32.mrb[9].mxu1 }
 0x7b2   :  { %v858_v36 = vadd.f32 %v857_v35, %v3356_v56 }
 0x7b3   :  { %v869_v37 = vsel %vm265_vm3, %v863_v34, -inf }
 0x7b4   :  { %870 = vmax.xlane.f32.xlu0 %v869_v37  ;;  %v866_v38 = vsel %vm265_vm3, %v858_v36, -inf }
 0x7b5   :  { %867 = vmax.xlane.f32.xlu1 %v866_v38 }
 0x7c6   :  { %3088 = vrot.lane.b32.xlu1 %v3314_v41, %s3246_s17 }
 0x7ca   :  { %979 = vrot.lane.b32.xlu1 %v3394_v61, %s3247_s18 }
 0x7ce   :  { %985 = vrot.lane.b32.xlu1 %v766_v32, %s3248_s19 }
 0x7d2   :  { %987 = vrot.lane.b32.xlu1 %v2746_v31, %s3248_s19 }
 0x841   :  { %v871_v55 = vpop.xlane.xlu0 %870 }
 0x842   :  { %v873_v56 = vsub.f32 %v863_v34, %v871_v55  ;;  %v868_v39 = vpop.xlane.xlu1 %867 }
 0x843   :  { %v872_v40 = vsub.f32 %v858_v36, %v868_v39  ;;  %v27_v39 = vld [vmem:[%s3731_s1 + $0x20] sm:$0xff] }
 0x844   :  { %v876_v44 = vmul.f32 1.442695, %v873_v56 }
 0x845   :  { %v874_v45 = vmul.f32 1.442695, %v872_v40  ;;  %v28_v40 = vld [vmem:[%s3731_s1 + $0x28] sm:$0xff] }
 0x846   :  { %v3089_v46 = vpop.permute.xlu1 %3088 }
 0x847   :  { %3160 = vpow2.f32 %v874_v45  ;;  %v3091_v47 = vunpack.i.h.bf16 %v3089_v46  ;;  %v3090_v48 = vunpack.i.l.bf16 %v3089_v46  ;;  %v29_v45 = vld [vmem:[%s3731_s1 + $0x30] sm:$0xff]  ;;  %v30_v46 = vld [vmem:[%s3731_s1 + $0x38] sm:$0xff] }
 0x848   :  { %3162 = vpow2.f32 %v876_v44  ;;  %v2947_v44 = vpack.c.bf16 %v28_v40, %v27_v39 }
 0x849   :  { %v2935_v41 = vpack.c.bf16 %v3091_v47, %v3090_v48  ;;  %v2951_v47 = vpack.c.bf16 %v30_v46, %v29_v45 }
 0x84a   :  { %v980_v10 = vpop.permute.xlu1 %979  ;;  %2948 = vmatprep.subr.bf16.mxu1 %v2947_v44 }
 0x84b   :  { %2936 = vmatprep.subr.bf16.mxu0 %v2935_v41  ;;  %v1000_v16 = vsel %vm179_vm1, %v3390_v59, %v980_v10  ;;  %v15_v59 = vld [vmem:[%s3730_s0] sm:$0xff]  ;;  %2950 = vmatpush3.bf16.msra.mxu1 %v2947_v44 }
 0x84c   :  { %2938 = vmatpush3.bf16.msra.mxu0 %v2935_v41  ;;  %v1144_v21 = vsel %vm45_vm0, %v15_v59, 0.0  ;;  %2952 = vmatprep.subr.bf16.mxu1 %v2951_v47 }
 0x84e   :  { %v986_v11 = vpop.permute.xlu1 %985 }
 0x84f   :  { %2954 = vmatpush3.bf16.msra.mxu1 %v2951_v47 }
 0x851   :  { %v3161_v49 = vpop.eup %3160 }
 0x852   :  { %v878_v51 = vsel %vm265_vm3, %v3161_v49, 0.0  ;;  %v3163_v52 = vpop.eup %3162  ;;  %v988_v13 = vpop.permute.xlu1 %987 }
 0x853   :  { %879 = vadd.xlane.f32.xlu0 %v878_v51  ;;  %v881_v53 = vsel %vm265_vm3, %v3163_v52, 0.0  ;;  %v1002_v18 = vsel %vm265_vm3, %v1000_v16, %v988_v13 }
 0x857   :  { %882 = vadd.xlane.f32.xlu0 %v881_v53 }
 0x86d   :  { %977 = vrot.lane.b32.xlu0 %v3396_v62, %s3247_s18  ;;  %v32_v62 = vld [vmem:[%s3731_s1 + $0x48] sm:$0xff] }
 0x86e   :  { %v3445_v5 = vpack.c.bf16 %v32_v62, %v31_v3 }
 0x870   :  { %2940 = vmatprep.subr.bf16.mxu0 %v3445_v5 }
 0x8e0   :  { %v880_v54 = vpop.xlane.xlu0 %879 }
 0x8e1   :  { %3164 = vrcp.f32 %v880_v54 }
 0x8e4   :  { %v883_v57 = vpop.xlane.xlu0 %882 }
 0x8e5   :  { %3166 = vrcp.f32 %v883_v57 }
 0x8e8   :  { %v978_v12 = vpop.permute.xlu0 %977 }
 0x8e9   :  { %v999_v14 = vsel %vm179_vm1, %v3392_v60, %v978_v12 }
 0x8ea   :  { %v1001_v17 = vsel %vm265_vm3, %v999_v14, %v986_v11  ;;  %v2543_v11 = vld [vmem:[%s3732_s2 + $0x9] ss:$0 sm:$0xff] }
 0x8eb   :  { %v3165_v58 = vpop.eup %3164 }
 0x8ec   :  { %v886_v61 = vmul.f32 %v3165_v58, %v3161_v49 }
 0x8ee   :  { %2758 = vmatprep.mubr.msk.f32.mxu0 %vm265_vm3, %v886_v61 }
 0x8ef   :  { %v3167_v63 = vpop.eup %3166 }
 0x8f0   :  { %v887_v2 = vmul.f32 %v3167_v63, %v3163_v52 }
 0x8f2   :  { %2759 = vmatmul.mubr.msk.f32.vlgmr.msra.gmra.mrb[6].mxu0 %vm265_vm3, %v887_v2 }
 0x8f3   :  { %2942 = vmatpush3.bf16.msra.mxu0 %v3445_v5 }
 0x8f4   :  { %2944 = vmatprep.subr.bf16.mxu0 %v3450_v7 }
 0x8f7   :  { %2946 = vmatpush3.bf16.msra.mxu0 %v3450_v7 }
 0x8f8   :  { %2956 = vmatprep.subr.bf16.mxu0 %v2947_v44 }
 0x9c5   :  { %v2760_v8 = vpop.f32.mrb[6].mxu0 }
 0x9c6   :  { %995 = vrot.lane.b32.xlu1 %v2760_v8, %s3249_s28  ;;  %v966_v9 = vpop.f32.mrb[7].mxu0 }
 0x9c7   :  { %993 = vrot.lane.b32.xlu0 %v966_v9, %s3249_s28  ;;  %v2542_v9 = vld [vmem:[%s3732_s2 + $0x8] ss:$0 sm:$0xff] }
 0xa38   :  { %v996_v15 = vpop.permute.xlu1 %995 }
 0xa39   :  { %v994_v42 = vpop.permute.xlu0 %993  ;;  %v1005_v19 = vsel %vm1003_vm4, %v1002_v18, %v996_v15 }
 0xa3a   :  { %v1004_v43 = vsel %vm1003_vm4, %v1001_v17, %v994_v42 }
 0xa3b   :  { %2769 = vmatprep.mubr.msk.f32.mxu0 %vm45_vm0, %v1004_v43 }
 0xa3c   :  { %2770 = vmatmul.mubr.msk.f32.vlgmr.msra.gmra.mrb[8].mxu0 %vm45_vm0, %v1005_v19 }
 0xa3d   :  { %2958 = vmatpush3.bf16.msra.mxu0 %v2947_v44 }
 0xa3e   :  { %2960 = vmatprep.subr.bf16.mxu0 %v2951_v47 }
 0xa41   :  { %2962 = vmatpush3.bf16.msra.mxu0 %v2951_v47 }
 0xb0f   :  { %v2771_v20 = vpop.f32.mrb[8].mxu0 }
 0xb10   :  { %1091 = vrot.lane.b32.xlu1 %v2771_v20, %s3240_s11  ;;  %v1078_v60 = vpop.f32.mrb[9].mxu0 }
 0xb11   :  { %1089 = vrot.lane.b32.xlu0 %v1078_v60, %s3240_s11 }
 0xb30   :  { %1145 = vadd.xlane.f32.xlu0 %v1144_v21 }
 0xb34   :  { %1148 = vadd.xlane.f32.xlu1 %v1147_v23 }
 0xb82   :  { %v1092_v24 = vpop.permute.xlu1 %1091 }
 0xb83   :  { %v1090_v26 = vpop.permute.xlu0 %1089  ;;  %v1096_v27 = vadd.f32 %v1092_v24, %v3281_v1 }
 0xb84   :  { %v1095_v28 = vadd.f32 %v1090_v26, %v3276_v0 }
 0xb85   :  { %v3485_v30 = vadd.f32 %v2541_v25, %v1096_v27 }
 0xb86   :  { %v3483_v29 = vadd.f32 %v2541_v25, %v1095_v28  ;;  %v2544_v28 = vld [vmem:[%s3732_s2 + $0x1] ss:$0 sm:$0xff] }
 0xb87   :  { %v1109_v32 = vsel %vm45_vm0, %v3485_v30, 0.0 }
 0xb88   :  { %v1106_v31 = vsel %vm45_vm0, %v3483_v29, 0.0 }
 0xb89   :  { %1107 = vadd.xlane.f32.xlu0 %v1106_v31 }
 0xb8d   :  { %1110 = vadd.xlane.f32.xlu0 %v1109_v32 }
 0xbbd   :  { %v1146_v33 = vpop.xlane.xlu0 %1145 }
 0xbbe   :  { %v1150_v34 = vmul.f32 0.03125, %v1146_v33 }
 0xbc0   :  { %v1152_v35 = vsub.f32 %v15_v59, %v1150_v34 }
 0xbc1   :  { %v1149_v36 = vpop.xlane.xlu1 %1148 }
 0xbc2   :  { %v1151_v37 = vmul.f32 0.03125, %v1149_v36  ;;  %v1154_v1 = vmul.f32 %v1152_v35, %v1152_v35 }
 0xbc4   :  { %v1153_v38 = vsub.f32 %v16_v22, %v1151_v37  ;;  %v1156_v0 = vsel %vm45_vm0, %v1154_v1, 0.0 }
 0xbc5   :  { %1157 = vadd.xlane.f32.xlu0 %v1156_v0 }
 0xbc6   :  { %v1155_v55 = vmul.f32 %v1153_v38, %v1153_v38 }
 0xbc8   :  { %v1159_v56 = vsel %vm45_vm0, %v1155_v55, 0.0 }
 0xbc9   :  { %1160 = vadd.xlane.f32.xlu1 %v1159_v56 }
 0xc16   :  { %v1108_v48 = vpop.xlane.xlu0 %1107 }
 0xc17   :  { %v1112_v41 = vmul.f32 0.03125, %v1108_v48 }
 0xc19   :  { %v1114_v49 = vsub.f32 %v3483_v29, %v1112_v41 }
 0xc1a   :  { %v1111_v51 = vpop.xlane.xlu0 %1110 }
 0xc1b   :  { %v1113_v52 = vmul.f32 0.03125, %v1111_v51  ;;  %v1116_v53 = vmul.f32 %v1114_v49, %v1114_v49  ;;  %v3553_v51 = vld [vmem:[%s3730_s0 + $0x38] sm:$0xff] }
 0xc1d   :  { %v1115_v54 = vsub.f32 %v3485_v30, %v1113_v52  ;;  %v1118_v57 = vsel %vm45_vm0, %v1116_v53, 0.0  ;;  %v3558_v52 = vld [vmem:[%s3730_s0 + $0x30] sm:$0xff]  ;;  %s3250_s0 = smov 32  }
 0xc1e   :  { %1119 = vadd.xlane.f32.xlu0 %v1118_v57 }
 0xc1f   :  { %v1117_v58 = vmul.f32 %v1115_v54, %v1115_v54 }
 0xc21   :  { %v1121_v61 = vsel %vm45_vm0, %v1117_v58, 0.0 }
 0xc22   :  { %1122 = vadd.xlane.f32.xlu1 %v1121_v61 }
 0xc52   :  { %v1158_v63 = vpop.xlane.xlu0 %1157 }
 0xc53   :  { %v1162_v2 = vmul.f32 0.03125, %v1158_v63 }
 0xc55   :  { %v1164_v3 = vadd.f32 1e-05, %v1162_v2 }
 0xc56   :  { %v1161_v62 = vpop.xlane.xlu1 %1160 }
 0xc57   :  { %3168 = vrsqrt.f32 %v1164_v3  ;;  %v1163_v4 = vmul.f32 0.03125, %v1161_v62 }
 0xc59   :  { %v1165_v6 = vadd.f32 1e-05, %v1163_v4 }
 0xc5b   :  { %3170 = vrsqrt.f32 %v1165_v6 }
 0xc61   :  { %v3169_v8 = vpop.eup %3168 }
 0xc62   :  { %v1168_v10 = vmul.f32 %v3169_v8, %v1152_v35 }
 0xc64   :  { %v1170_v12 = vmul.f32 %v2542_v9, %v1168_v10 }
 0xc65   :  { %v3171_v13 = vpop.eup %3170 }
 0xc66   :  { %v1169_v14 = vmul.f32 %v3171_v13, %v1153_v38  ;;  %v1172_v15 = vadd.f32 %v2543_v11, %v1170_v12 }
 0xc68   :  { %2791 = vmatprep.mubr.msk.f32.mxu0 %vm45_vm0, %v1172_v15  ;;  %v1171_v16 = vmul.f32 %v2542_v9, %v1169_v14 }
 0xc6a   :  { %v1173_v17 = vadd.f32 %v2543_v11, %v1171_v16 }
 0xc6c   :  { %2792 = vmatmul.mubr.msk.f32.vlgmr.msra.gmra.mrb[10].mxu0 %vm45_vm0, %v1173_v17 }
 0xcab   :  { %v1120_v42 = vpop.xlane.xlu0 %1119 }
 0xcac   :  { %v1124_v18 = vmul.f32 0.03125, %v1120_v42 }
 0xcae   :  { %v1126_v43 = vadd.f32 1e-05, %v1124_v18 }
 0xcaf   :  { %v1123_v19 = vpop.xlane.xlu1 %1122 }
 0xcb0   :  { %3172 = vrsqrt.f32 %v1126_v43  ;;  %v1125_v20 = vmul.f32 0.03125, %v1123_v19 }
 0xcb2   :  { %v1127_v60 = vadd.f32 1e-05, %v1125_v20 }
 0xcb4   :  { %3174 = vrsqrt.f32 %v1127_v60 }
 0xcba   :  { %v3173_v59 = vpop.eup %3172 }
 0xcbb   :  { %v1130_v21 = vmul.f32 %v3173_v59, %v1114_v49 }
 0xcbd   :  { %v1136_v22 = vmul.f32 %v2542_v9, %v1130_v21 }
 0xcbe   :  { %v3175_v23 = vpop.eup %3174 }
 0xcbf   :  { %v1131_v24 = vmul.f32 %v3175_v23, %v1115_v54  ;;  %v1142_v25 = vadd.f32 %v2543_v11, %v1136_v22 }
 0xcc1   :  { %2780 = vmatprep.mubr.msk.f32.mxu1 %vm45_vm0, %v1142_v25  ;;  %v1137_v26 = vmul.f32 %v2542_v9, %v1131_v24 }
 0xcc3   :  { %v1143_v27 = vadd.f32 %v2543_v11, %v1137_v26 }
 0xcc5   :  { %2781 = vmatmul.mubr.msk.f32.vlgmr.msra.gmra.mrb[10].mxu1 %vm45_vm0, %v1143_v27 }
 0xd3f   :  { %v2793_v31 = vpop.f32.mrb[10].mxu0 }
 0xd40   :  { %v1338_v32 = vadd.f32 %v2793_v31, %v2544_v28  ;;  %v1332_v33 = vpop.f32.mrb[11].mxu0 }
 0xd41   :  { %v1333_v34 = vadd.f32 %v2544_v28, %v1332_v33 }
 0xd43   :  { %v3522_v35 = vpack.i.bf16 %v1338_v32, %v1333_v34 }
 0xd45   :  { %3098 = vrot.lane.b32.xlu1 %v3522_v35, %s3236_s30  ;;  %3093 = vrot.lane.b32.xlu0 %v3522_v35, %s3237_s4 }
 0xd98   :  { %v2782_v36 = vpop.f32.mrb[10].mxu1 }
 0xd99   :  { %v1251_v37 = vpop.f32.mrb[11].mxu1  ;;  %v1257_v38 = vadd.f32 %v2782_v36, %v2544_v28 }
 0xd9a   :  { %v1252_v1 = vadd.f32 %v2544_v28, %v1251_v37 }
 0xd9b   :  { %v3534_v55 = vmul.f32 0.35355338, %v1257_v38 }
 0xd9c   :  { %v3528_v0 = vmul.f32 0.35355338, %v1252_v1 }
 0xd9e   :  { %1543 = vrot.lane.b32.xlu1 %v3528_v0, %s3238_s5  ;;  %2798 = vmatprep.mubr.msk.f32.mxu1 %vm179_vm1, %v3528_v0 }
 0xda2   :  { %1545 = vrot.lane.b32.xlu1 %v3534_v55, %s3238_s5 }
 0xdb7   :  { %v3099_v56 = vpop.permute.xlu1 %3098  ;;  %v3094_v39 = vpop.permute.xlu0 %3093 }
 0xdb8   :  { %v3101_v40 = vunpack.i.h.bf16 %v3099_v56  ;;  %v3100_v44 = vunpack.i.l.bf16 %v3099_v56  ;;  %v3096_v45 = vunpack.i.h.bf16 %v3094_v39  ;;  %v3095_v46 = vunpack.i.l.bf16 %v3094_v39 }
 0xdba   :  { %v2963_v47 = vpack.c.bf16 %v3096_v45, %v3095_v46  ;;  %v2973_v48 = vpack.c.bf16 %v3101_v40, %v3100_v44 }
 0xdbc   :  { %2965 = vmatprep.subr.msk.bf16.mxu1 %vm3332_vm2, %v2963_v47 }
 0xdbd   :  { %2968 = vmatpush3.bf16.xpose.msk.msra.mxu1 %vm3332_vm2, %v2963_v47 }
 0xdbe   :  { %2975 = vmatprep.subr.msk.bf16.mxu1 %vm3332_vm2, %v2973_v48 }
 0xdc4   :  { %2799 = vmatmul.mubr.msk.f32.vlgmr.msra.gmra.mrb[12].mxu1 %vm179_vm1, %v3534_v55 }
 0xdc5   :  { %2978 = vmatpush3.bf16.xpose.msk.msra.mxu1 %vm3332_vm2, %v2973_v48 }
 0xe10   :  { %v1544_v41 = vpop.permute.xlu1 %1543 }
 0xe11   :  { %2812 = vmatprep.mubr.msk.f32.mxu1 %vm179_vm1, %v1544_v41 }
 0xe14   :  { %v1546_v49 = vpop.permute.xlu1 %1545 }
 0xe15   :  { %2813 = vmatmul.mubr.msk.f32.vlgmr.msra.gmra.mrb[14].mxu1 %vm179_vm1, %v1546_v49 }
 0xe97   :  { %v2800_v53 = vpop.f32.mrb[12].mxu1 }
 0xe98   :  { %v1431_v54 = vadd.f32 %v2800_v53, %v3553_v51  ;;  %v1425_v57 = vpop.f32.mrb[13].mxu1 }
 0xe99   :  { %v1426_v58 = vadd.f32 %v1425_v57, %v3558_v52 }
 0xe9a   :  { %v1437_v61 = vsel %vm265_vm3, %v1431_v54, -inf }
 0xe9b   :  { %1438 = vmax.xlane.f32.xlu1 %v1437_v61  ;;  %v1434_v63 = vsel %vm265_vm3, %v1426_v58, -inf }
 0xe9c   :  { %1435 = vmax.xlane.f32.xlu0 %v1434_v63 }
 0xee8   :  { %v2814_v2 = vpop.f32.mrb[14].mxu1 }
 0xee9   :  { %v1625_v3 = vpop.f32.mrb[15].mxu1  ;;  %v1631_v4 = vadd.f32 %v2814_v2, %v3553_v51 }
 0xeea   :  { %v1626_v62 = vadd.f32 %v1625_v3, %v3558_v52 }
 0xeeb   :  { %v1637_v8 = vsel %vm265_vm3, %v1631_v4, -inf }
 0xeec   :  { %v1634_v6 = vsel %vm265_vm3, %v1626_v62, -inf }
 0xeed   :  { %1635 = vmax.xlane.f32.xlu0 %v1634_v6 }
 0xef1   :  { %1638 = vmax.xlane.f32.xlu0 %v1637_v8 }
 0xf28   :  { %v1439_v9 = vpop.xlane.xlu1 %1438 }
 0xf29   :  { %v1441_v10 = vsub.f32 %v1431_v54, %v1439_v9  ;;  %v1436_v11 = vpop.xlane.xlu0 %1435 }
 0xf2a   :  { %v1440_v12 = vsub.f32 %v1426_v58, %v1436_v11 }
 0xf2b   :  { %v1444_v13 = vmul.f32 1.442695, %v1441_v10 }
 0xf2c   :  { %v1442_v14 = vmul.f32 1.442695, %v1440_v12 }
 0xf2d   :  { %3176 = vpow2.f32 %v1444_v13 }
 0xf2e   :  { %3178 = vpow2.f32 %v1442_v14 }
 0xf37   :  { %v3177_v15 = vpop.eup %3176 }
 0xf38   :  { %v3179_v16 = vpop.eup %3178  ;;  %v1449_v17 = vsel %vm265_vm3, %v3177_v15, 0.0 }
 0xf39   :  { %1450 = vadd.xlane.f32.xlu1 %v1449_v17  ;;  %v1446_v42 = vsel %vm265_vm3, %v3179_v16, 0.0 }
 0xf3a   :  { %1447 = vadd.xlane.f32.xlu0 %v1446_v42 }
 0xf7a   :  { %v1636_v18 = vpop.xlane.xlu0 %1635 }
 0xf7b   :  { %v1640_v43 = vsub.f32 %v1626_v62, %v1636_v18 }
 0xf7d   :  { %v1642_v19 = vmul.f32 1.442695, %v1640_v43 }
 0xf7e   :  { %v1639_v20 = vpop.xlane.xlu0 %1638 }
 0xf7f   :  { %3180 = vpow2.f32 %v1642_v19  ;;  %v1641_v60 = vsub.f32 %v1631_v4, %v1639_v20 }
 0xf81   :  { %v1644_v59 = vmul.f32 1.442695, %v1641_v60 }
 0xf83   :  { %3182 = vpow2.f32 %v1644_v59 }
 0xf89   :  { %v3181_v21 = vpop.eup %3180 }
 0xf8a   :  { %v1646_v22 = vsel %vm265_vm3, %v3181_v21, 0.0 }
 0xf8b   :  { %1647 = vadd.xlane.f32.xlu0 %v1646_v22 }
 0xf8d   :  { %v3183_v23 = vpop.eup %3182 }
 0xf8e   :  { %v1649_v24 = vsel %vm265_vm3, %v3183_v23, 0.0 }
 0xf8f   :  { %1650 = vadd.xlane.f32.xlu1 %v1649_v24 }
 0xfa0   :  { %3108 = vrot.lane.b32.xlu1 %v3522_v35, %s3239_s10 }
 0xfa1   :  { %3103 = vrot.lane.b32.xlu0 %v3522_v35, %s3240_s11 }
 0xfa4   :  { %3113 = vrot.lane.b32.xlu1 %v3522_v35, %s3241_s12 }
 0xfa5   :  { %1745 = vrot.lane.b32.xlu0 %v3534_v55, %s3242_s13 }
 0xfa8   :  { %1743 = vrot.lane.b32.xlu1 %v3528_v0, %s3242_s13 }
 0xfc6   :  { %v1451_v28 = vpop.xlane.xlu1 %1450 }
 0xfc7   :  { %v1448_v25 = vpop.xlane.xlu0 %1447 }
 0xfc8   :  { %3184 = vrcp.f32 %v1448_v25 }
 0xfc9   :  { %3186 = vrcp.f32 %v1451_v28 }
 0xfd2   :  { %v3185_v26 = vpop.eup %3184 }
 0xfd3   :  { %v1454_v27 = vmul.f32 %v3185_v26, %v3179_v16  ;;  %v3187_v1 = vpop.eup %3186 }
 0xfd4   :  { %v1455_v44 = vmul.f32 %v3187_v1, %v3177_v15 }
 0xfd5   :  { %2805 = vmatprep.mubr.msk.f32.mxu0 %vm265_vm3, %v1454_v27 }
0x1018   :  { %v1648_v31 = vpop.xlane.xlu0 %1647 }
0x1019   :  { %3188 = vrcp.f32 %v1648_v31 }
0x101c   :  { %v1651_v32 = vpop.xlane.xlu1 %1650  ;;  %v3104_v33 = vpop.permute.xlu0 %3103 }
0x101d   :  { %3190 = vrcp.f32 %v1651_v32  ;;  %v3106_v34 = vunpack.i.h.bf16 %v3104_v33  ;;  %v3105_v36 = vunpack.i.l.bf16 %v3104_v33 }
0x101f   :  { %v2969_v37 = vpack.c.bf16 %v3106_v34, %v3105_v36 }
0x1020   :  { %v3109_v38 = vpop.permute.xlu1 %3108  ;;  %v1746_v58 = vpop.permute.xlu0 %1745 }
0x1021   :  { %v3111_v56 = vunpack.i.h.bf16 %v3109_v38  ;;  %v3110_v39 = vunpack.i.l.bf16 %v3109_v38  ;;  %2970 = vmatprep.subr.bf16.mxu0 %v2969_v37 }
0x1022   :  { %2972 = vmatpush3.bf16.msra.mxu0 %v2969_v37 }
0x1023   :  { %v3189_v40 = vpop.eup %3188  ;;  %v2979_v45 = vpack.c.bf16 %v3111_v56, %v3110_v39 }
0x1024   :  { %v3114_v46 = vpop.permute.xlu1 %3113  ;;  %v1654_v47 = vmul.f32 %v3189_v40, %v3181_v21 }
0x1025   :  { %v3116_v48 = vunpack.i.h.bf16 %v3114_v46  ;;  %v3115_v41 = vunpack.i.l.bf16 %v3114_v46  ;;  %2806 = vmatmul.mubr.msk.f32.vlgmr.msra.gmra.mrb[12].mxu0 %vm265_vm3, %v1455_v44  ;;  %2980 = vmatprep.subr.bf16.mxu0 %v2979_v45 }
0x1026   :  { %2982 = vmatpush3.bf16.msra.mxu0 %v2979_v45  ;;  %2819 = vmatprep.mubr.msk.f32.mxu0 %vm265_vm3, %v1654_v47 }
0x1027   :  { %v3191_v49 = vpop.eup %3190  ;;  %v2983_v53 = vpack.c.bf16 %v3116_v48, %v3115_v41 }
0x1028   :  { %v1655_v54 = vmul.f32 %v3191_v49, %v3183_v23  ;;  %v1744_v57 = vpop.permute.xlu1 %1743 }
0x1029   :  { %2985 = vmatprep.subr.msk.bf16.mxu0 %vm3332_vm2, %v2983_v53 }
0x102a   :  { %2820 = vmatmul.mubr.msk.f32.vlgmr.msra.gmra.mrb[14].mxu0 %vm265_vm3, %v1655_v54 }
0x102b   :  { %2826 = vmatprep.mubr.msk.f32.mxu0 %vm179_vm1, %v1744_v57 }
0x102f   :  { %2988 = vmatpush3.bf16.xpose.msk.msra.mxu0 %vm3332_vm2, %v2983_v53 }
0x1036   :  { %2827 = vmatmul.mubr.msk.f32.vlgmr.msra.gmra.mrb[16].mxu0 %vm179_vm1, %v1746_v58 }
0x10f8   :  { %v3592_v61 = vpop.f32.mrb[12].mxu0 }
0x10f9   :  { %v3594_v63 = vpop.f32.mrb[13].mxu0 }
0x10fd   :  { %v3596_v2 = vpop.f32.mrb[14].mxu0 }
0x10fe   :  { %v3598_v3 = vpop.f32.mrb[15].mxu0 }
0x1109   :  { %v2828_v62 = vpop.f32.mrb[16].mxu0 }
0x110a   :  { %v1831_v4 = vadd.f32 %v2828_v62, %v3553_v51  ;;  %v1825_v6 = vpop.f32.mrb[17].mxu0 }
0x110b   :  { %v1826_v8 = vadd.f32 %v1825_v6, %v3558_v52 }
0x110c   :  { %v1837_v9 = vsel %vm265_vm3, %v1831_v4, -inf }
0x110d   :  { %1838 = vmax.xlane.f32.xlu0 %v1837_v9  ;;  %v1834_v10 = vsel %vm265_vm3, %v1826_v8, -inf }
0x110e   :  { %1835 = vmax.xlane.f32.xlu1 %v1834_v10 }
0x111f   :  { %3118 = vrot.lane.b32.xlu1 %v3522_v35, %s3243_s14 }
0x1123   :  { %1943 = vrot.lane.b32.xlu1 %v3528_v0, %s3244_s15 }
0x1127   :  { %1945 = vrot.lane.b32.xlu1 %v3534_v55, %s3244_s15 }
0x119a   :  { %v1839_v11 = vpop.xlane.xlu0 %1838 }
0x119b   :  { %v1841_v12 = vsub.f32 %v1831_v4, %v1839_v11  ;;  %v1836_v13 = vpop.xlane.xlu1 %1835 }
0x119c   :  { %v1840_v14 = vsub.f32 %v1826_v8, %v1836_v13 }
0x119d   :  { %v1844_v15 = vmul.f32 1.442695, %v1841_v12 }
0x119e   :  { %v1842_v16 = vmul.f32 1.442695, %v1840_v14 }
0x119f   :  { %3192 = vpow2.f32 %v1844_v15  ;;  %v3119_v17 = vpop.permute.xlu1 %3118 }
0x11a0   :  { %v3121_v42 = vunpack.i.h.bf16 %v3119_v17  ;;  %v3120_v18 = vunpack.i.l.bf16 %v3119_v17  ;;  %3194 = vpow2.f32 %v1842_v16 }
0x11a2   :  { %v2989_v43 = vpack.c.bf16 %v3121_v42, %v3120_v18 }
0x11a3   :  { %v1944_v31 = vpop.permute.xlu1 %1943 }
0x11a4   :  { %2990 = vmatprep.subr.bf16.mxu1 %v2989_v43 }
0x11a5   :  { %2992 = vmatpush3.bf16.msra.mxu1 %v2989_v43 }
0x11a7   :  { %v1946_v32 = vpop.permute.xlu1 %1945 }
0x11a9   :  { %v3193_v19 = vpop.eup %3192 }
0x11aa   :  { %v1849_v0 = vsel %vm265_vm3, %v3193_v19, 0.0  ;;  %v3195_v20 = vpop.eup %3194 }
0x11ab   :  { %1850 = vadd.xlane.f32.xlu0 %v1849_v0  ;;  %v1846_v55 = vsel %vm265_vm3, %v3195_v20, 0.0 }
0x11af   :  { %1847 = vadd.xlane.f32.xlu0 %v1846_v55 }
0x11c5   :  { %3123 = vrot.lane.b32.xlu0 %v3522_v35, %s3245_s16 }
0x1238   :  { %v1851_v60 = vpop.xlane.xlu0 %1850 }
0x1239   :  { %3196 = vrcp.f32 %v1851_v60 }
0x123c   :  { %v1848_v59 = vpop.xlane.xlu0 %1847 }
0x123d   :  { %3198 = vrcp.f32 %v1848_v59 }
0x1240   :  { %v3124_v21 = vpop.permute.xlu0 %3123 }
0x1241   :  { %v3126_v22 = vunpack.i.h.bf16 %v3124_v21  ;;  %v3125_v23 = vunpack.i.l.bf16 %v3124_v21 }
0x1243   :  { %v2993_v24 = vpack.c.bf16 %v3126_v22, %v3125_v23  ;;  %v3197_v25 = vpop.eup %3196 }
0x1244   :  { %v1855_v28 = vmul.f32 %v3197_v25, %v3193_v19 }
0x1245   :  { %2995 = vmatprep.subr.msk.bf16.mxu1 %vm3332_vm2, %v2993_v24 }
0x1247   :  { %v3199_v26 = vpop.eup %3198 }
0x1248   :  { %v1854_v27 = vmul.f32 %v3199_v26, %v3195_v20 }
0x124a   :  { %2833 = vmatprep.mubr.msk.f32.mxu1 %vm265_vm3, %v1854_v27 }
0x124b   :  { %2834 = vmatmul.mubr.msk.f32.vlgmr.msra.gmra.mrb[16].mxu1 %vm265_vm3, %v1855_v28 }
0x124c   :  { %2998 = vmatpush3.bf16.xpose.msk.msra.mxu1 %vm3332_vm2, %v2993_v24  ;;  %2840 = vmatprep.mubr.msk.f32.mxu1 %vm179_vm1, %v1944_v31 }
0x124d   :  { %3012 = vmatprep.subr.bf16.mxu1 %v3445_v5 }
0x1253   :  { %2841 = vmatmul.mubr.msk.f32.vlgmr.msra.gmra.mrb[18].mxu1 %vm179_vm1, %v1946_v32  ;;  %v35_v32 = vld [vmem:[%s3731_s1 + $0x60] sm:$0xff] }
0x1254   :  { %3014 = vmatpush3.bf16.msra.mxu1 %v3445_v5 }
0x1255   :  { %3016 = vmatprep.subr.bf16.mxu1 %v3450_v7 }
0x1258   :  { %3018 = vmatpush3.bf16.msra.mxu1 %v3450_v7 }
0x131e   :  { %v2835_v33 = vpop.f32.mrb[16].mxu1 }
0x131f   :  { %v1934_v34 = vpop.f32.mrb[17].mxu1 }
0x1326   :  { %v2842_v36 = vpop.f32.mrb[18].mxu1 }
0x1327   :  { %v2031_v37 = vadd.f32 %v2842_v36, %v3553_v51  ;;  %v2025_v50 = vpop.f32.mrb[19].mxu1 }
0x1328   :  { %v2026_v1 = vadd.f32 %v2025_v50, %v3558_v52 }
0x1329   :  { %v2037_v38 = vsel %vm265_vm3, %v2031_v37, -inf }
0x132a   :  { %2038 = vmax.xlane.f32.xlu0 %v2037_v38  ;;  %v2034_v56 = vsel %vm265_vm3, %v2026_v1, -inf  ;;  %v40_v38 = vld [vmem:[%s3731_s1 + $0x88] sm:$0xff] }
0x132b   :  { %2035 = vmax.xlane.f32.xlu1 %v2034_v56 }
0x133c   :  { %3128 = vrot.lane.b32.xlu1 %v3522_v35, %s3246_s17 }
0x1340   :  { %2147 = vrot.lane.b32.xlu1 %v3596_v2, %s3247_s18 }
0x1344   :  { %2153 = vrot.lane.b32.xlu1 %v1934_v34, %s3248_s19  ;;  %v37_v34 = vld [vmem:[%s3731_s1 + $0x70] sm:$0xff] }
0x1348   :  { %2155 = vrot.lane.b32.xlu1 %v2835_v33, %s3248_s19  ;;  %v36_v33 = vld [vmem:[%s3731_s1 + $0x68] sm:$0xff] }
0x1349   :  { %v3019_v36 = vpack.c.bf16 %v36_v33, %v35_v32 }
0x13b7   :  { %v2039_v51 = vpop.xlane.xlu0 %2038 }
0x13b8   :  { %v2041_v39 = vsub.f32 %v2031_v37, %v2039_v51  ;;  %v2036_v40 = vpop.xlane.xlu1 %2035  ;;  %v38_v37 = vld [vmem:[%s3731_s1 + $0x78] sm:$0xff] }
0x13b9   :  { %v2040_v52 = vsub.f32 %v2026_v1, %v2036_v40  ;;  %v3023_v50 = vpack.c.bf16 %v38_v37, %v37_v34  ;;  %v39_v1 = vld [vmem:[%s3731_s1 + $0x80] sm:$0xff] }
0x13ba   :  { %v2044_v44 = vmul.f32 1.442695, %v2041_v39  ;;  %v3027_v56 = vpack.c.bf16 %v40_v38, %v39_v1 }
0x13bb   :  { %v2042_v45 = vmul.f32 1.442695, %v2040_v52 }
0x13bc   :  { %v3129_v46 = vpop.permute.xlu1 %3128 }
0x13bd   :  { %3200 = vpow2.f32 %v2042_v45  ;;  %v3131_v47 = vunpack.i.h.bf16 %v3129_v46  ;;  %v3130_v48 = vunpack.i.l.bf16 %v3129_v46 }
0x13be   :  { %3202 = vpow2.f32 %v2044_v44 }
0x13bf   :  { %v2999_v41 = vpack.c.bf16 %v3131_v47, %v3130_v48  ;;  %v2576_v47 = vld [vmem:[%s3732_s2 + $0xa] ss:$0 sm:$0xff] }
0x13c0   :  { %v2148_v9 = vpop.permute.xlu1 %2147 }
0x13c1   :  { %3000 = vmatprep.subr.bf16.mxu0 %v2999_v41 }
0x13c2   :  { %3002 = vmatpush3.bf16.msra.mxu0 %v2999_v41  ;;  %v2577_v41 = vld [vmem:[%s3732_s2 + $0xb] ss:$0 sm:$0xff] }
0x13c3   :  { %3004 = vmatprep.subr.bf16.mxu0 %v3445_v5 }
0x13c4   :  { %v2154_v10 = vpop.permute.xlu1 %2153 }
0x13c7   :  { %v3201_v35 = vpop.eup %3200 }
0x13c8   :  { %v2046_v49 = vsel %vm265_vm3, %v3201_v35, 0.0  ;;  %v3203_v53 = vpop.eup %3202  ;;  %v2156_v12 = vpop.permute.xlu1 %2155 }
0x13c9   :  { %2047 = vadd.xlane.f32.xlu0 %v2046_v49  ;;  %v2049_v54 = vsel %vm265_vm3, %v3203_v53, 0.0 }
0x13cd   :  { %2050 = vadd.xlane.f32.xlu0 %v2049_v54 }
0x13e3   :  { %2145 = vrot.lane.b32.xlu0 %v3598_v3, %s3247_s18 }
0x1456   :  { %v2048_v57 = vpop.xlane.xlu0 %2047 }
0x1457   :  { %3204 = vrcp.f32 %v2048_v57 }
0x145a   :  { %v2051_v58 = vpop.xlane.xlu0 %2050 }
0x145b   :  { %3206 = vrcp.f32 %v2051_v58 }
0x145e   :  { %v2146_v11 = vpop.permute.xlu0 %2145 }
0x145f   :  { %v2167_v13 = vsel %vm179_vm1, %v3594_v63, %v2146_v11 }
0x1460   :  { %v2169_v15 = vsel %vm265_vm3, %v2167_v13, %v2154_v10 }
0x1461   :  { %v3205_v2 = vpop.eup %3204 }
0x1462   :  { %v2054_v62 = vmul.f32 %v3205_v2, %v3201_v35  ;;  %v41_v2 = vld [vmem:[%s3731_s1 + $0x90] sm:$0xff] }
0x1464   :  { %2847 = vmatprep.mubr.msk.f32.mxu0 %vm265_vm3, %v2054_v62  ;;  %v42_v62 = vld [vmem:[%s3731_s1 + $0x98] sm:$0xff]  ;;  %s3251_s1 = smov [#allocation2]  }
0x1465   :  { %v3207_v4 = vpop.eup %3206 }
0x1466   :  { %v2055_v6 = vmul.f32 %v3207_v4, %v3203_v53  ;;  %v3031_v4 = vpack.c.bf16 %v42_v62, %v41_v2 }
0x1468   :  { %2848 = vmatmul.mubr.msk.f32.vlgmr.msra.gmra.mrb[18].mxu0 %vm265_vm3, %v2055_v6  ;;  %v2580_v6 = vld [vmem:[%s3732_s2 + $0x4] ss:$0 sm:$0xff] }
0x1469   :  { %3006 = vmatpush3.bf16.msra.mxu0 %v3445_v5  ;;  %v2168_v5 = vsel %vm179_vm1, %v3592_v61, %v2148_v9  ;;  %v2575_v61 = vld [vmem:[%s3732_s2 + $0x3] ss:$0 sm:$0xff] }
0x146a   :  { %3008 = vmatprep.subr.bf16.mxu0 %v3450_v7  ;;  %v2170_v16 = vsel %vm265_vm3, %v2168_v5, %v2156_v12 }
0x146d   :  { %3010 = vmatpush3.bf16.msra.mxu0 %v3450_v7 }
0x146e   :  { %3020 = vmatprep.subr.bf16.mxu0 %v3019_v36 }
0x153b   :  { %v2849_v8 = vpop.f32.mrb[18].mxu0 }
0x153c   :  { %2163 = vrot.lane.b32.xlu1 %v2849_v8, %s3249_s28  ;;  %v2134_v3 = vpop.f32.mrb[19].mxu0 }
0x153d   :  { %2161 = vrot.lane.b32.xlu0 %v2134_v3, %s3249_s28 }
0x15ae   :  { %v2164_v14 = vpop.permute.xlu1 %2163 }
0x15af   :  { %v2162_v7 = vpop.permute.xlu0 %2161  ;;  %v2172_v42 = vsel %vm1003_vm4, %v2170_v16, %v2164_v14  ;;  %v2583_v14 = vld [vmem:[%s3732_s2 + $0x5] ss:$0 sm:$0xff] }
0x15b0   :  { %v2171_v17 = vsel %vm1003_vm4, %v2169_v15, %v2162_v7 }
0x15b1   :  { %2858 = vmatprep.mubr.msk.f32.mxu0 %vm45_vm0, %v2171_v17 }
0x15b2   :  { %2859 = vmatmul.mubr.msk.f32.vlgmr.msra.gmra.mrb[20].mxu0 %vm45_vm0, %v2172_v42 }
0x15b3   :  { %3022 = vmatpush3.bf16.msra.mxu0 %v3019_v36 }
0x15b4   :  { %3024 = vmatprep.subr.bf16.mxu0 %v3023_v50 }
0x15b7   :  { %3026 = vmatpush3.bf16.msra.mxu0 %v3023_v50 }
0x15b8   :  { %3028 = vmatprep.subr.bf16.mxu0 %v3027_v56 }
0x15bb   :  { %3030 = vmatpush3.bf16.msra.mxu0 %v3027_v56 }
0x15bc   :  { %3032 = vmatprep.subr.bf16.mxu0 %v3031_v4 }
0x15bf   :  { %3034 = vmatpush3.bf16.msra.mxu0 %v3031_v4 }
0x1685   :  { %v2860_v18 = vpop.f32.mrb[20].mxu0 }
0x1686   :  { %2258 = vrot.lane.b32.xlu1 %v2860_v18, %s3250_s0  ;;  %v2245_v63 = vpop.f32.mrb[21].mxu0 }
0x1687   :  { %2256 = vrot.lane.b32.xlu0 %v2245_v63, %s3250_s0  ;;  %s2499_s0 = sshll.u32 %s3251_s1, 4  ;;  %s2500_s0 = int_to_ptr.vmem [resolvable:$true] %s2499_s0 }
0x1688   :  { %s3212_s10 = scalar_lea.vmem %s2500_s0, 256  ;;  %p3217_p1 = scmp.lt.s32.totalorder %s2500_s0, %s2500_s0 }
0x1689   :  { %p3213_p0 = scmp.ne.s32.totalorder %s2500_s0, %s3212_s10  ;;  %p3218_p2 = scmp.lt.s32.totalorder %s3212_s10, %s3212_s10 }
0x168b   :  { %p3219_p3 = por %p3218_p2, %p3217_p1 }
0x168d   :  { %p3220_p4 = pnand %p3219_p3, %p3213_p0 }
0x16f8   :  { %v2259_v43 = vpop.permute.xlu1 %2258 }
0x16f9   :  { %v2263_v19 = vadd.f32 %v2259_v43, %v3485_v30  ;;  %v2257_v0 = vpop.permute.xlu0 %2256 }
0x16fa   :  { %v2262_v20 = vadd.f32 %v2257_v0, %v3483_v29 }
0x16fb   :  { %v3663_v55 = vadd.f32 %v2575_v61, %v2263_v19 }
0x16fc   :  { %v3665_v60 = vadd.f32 %v2575_v61, %v2262_v20 }
0x16fd   :  { %v2276_v59 = vsel %vm45_vm0, %v3663_v55, 0.0 }
0x16fe   :  { %2277 = vadd.xlane.f32.xlu1 %v2276_v59  ;;  %v2273_v21 = vsel %vm45_vm0, %v3665_v60, 0.0 }
0x16ff   :  { %2274 = vadd.xlane.f32.xlu0 %v2273_v21 }
0x178b   :  { %v2278_v22 = vpop.xlane.xlu1 %2277 }
0x178c   :  { %v2280_v23 = vmul.f32 0.03125, %v2278_v22  ;;  %v2275_v24 = vpop.xlane.xlu0 %2274 }
0x178d   :  { %v2279_v25 = vmul.f32 0.03125, %v2275_v24 }
0x178e   :  { %v2282_v30 = vsub.f32 %v3663_v55, %v2280_v23 }
0x178f   :  { %v2281_v29 = vsub.f32 %v3665_v60, %v2279_v25 }
0x1790   :  { %v2284_v28 = vmul.f32 %v2282_v30, %v2282_v30 }
0x1791   :  { %v2283_v26 = vmul.f32 %v2281_v29, %v2281_v29 }
0x1792   :  { %v2288_v31 = vsel %vm45_vm0, %v2284_v28, 0.0 }
0x1793   :  { %v2285_v27 = vsel %vm45_vm0, %v2283_v26, 0.0 }
0x1794   :  { %2286 = vadd.xlane.f32.xlu0 %v2285_v27 }
0x1798   :  { %2289 = vadd.xlane.f32.xlu0 %v2288_v31 }
0x1821   :  { %v2287_v51 = vpop.xlane.xlu0 %2286 }
0x1822   :  { %v2291_v39 = vmul.f32 0.03125, %v2287_v51 }
0x1824   :  { %v2293_v40 = vadd.f32 1e-05, %v2291_v39 }
0x1825   :  { %v2290_v52 = vpop.xlane.xlu0 %2289 }
0x1826   :  { %3208 = vrsqrt.f32 %v2293_v40  ;;  %v2292_v44 = vmul.f32 0.03125, %v2290_v52 }
0x1828   :  { %v2294_v45 = vadd.f32 1e-05, %v2292_v44 }
0x182a   :  { %3210 = vrsqrt.f32 %v2294_v45 }
0x1830   :  { %v3209_v46 = vpop.eup %3208 }
0x1831   :  { %v2297_v48 = vmul.f32 %v3209_v46, %v2281_v29 }
0x1833   :  { %v2303_v35 = vmul.f32 %v2576_v47, %v2297_v48 }
0x1834   :  { %v3211_v49 = vpop.eup %3210 }
0x1835   :  { %v2298_v53 = vmul.f32 %v3211_v49, %v2282_v30  ;;  %v2309_v54 = vadd.f32 %v2577_v41, %v2303_v35 }
0x1837   :  { %v2304_v57 = vmul.f32 %v2576_v47, %v2298_v53  ;;  %2869 = vmatprep.mubr.msk.f32.mxu1 %vm45_vm0, %v2309_v54 }
0x1839   :  { %v2310_v58 = vadd.f32 %v2577_v41, %v2304_v57 }
0x183b   :  { %2870 = vmatmul.mubr.msk.f32.vlgmr.msra.gmra.mrb[20].mxu1 %vm45_vm0, %v2310_v58 }
0x190e   :  { %v2871_v8 = vpop.f32.mrb[20].mxu1 }
0x190f   :  { %v2398_v3 = vadd.f32 %v2871_v8, %v2580_v6  ;;  %v2383_v9 = vpop.f32.mrb[21].mxu1 }
0x1910   :  { %v2397_v10 = vadd.f32 %v2580_v6, %v2383_v9 }
0x1911   :  { %v2400_v12 = vmax.f32 %v2398_v3, 0.0 }
0x1912   :  { %v2399_v11 = vmax.f32 %v2397_v10, 0.0 }
0x1914   :  { %2888 = vmatprep.mubr.msk.f32.mxu0 %vm2401_vm5, %v2399_v11 }
0x1915   :  { %2889 = vmatmul.mubr.msk.f32.vlgmr.msra.gmra.mrb[22].mxu0 %vm2401_vm5, %v2400_v12 }
0x19e8   :  { %v2890_v13 = vpop.f32.mrb[22].mxu0 }
0x19e9   :  { %v2484_v5 = vadd.f32 %v2890_v13, %v3663_v55  ;;  %v2474_v15 = vpop.f32.mrb[23].mxu0 }
0x19ea   :  { %v2483_v7 = vadd.f32 %v2474_v15, %v3665_v60 }
0x19eb   :  { %v2491_v16 = vadd.f32 %v2583_v14, %v2484_v5 }
0x19ec   :  { %v2490_v17 = vadd.f32 %v2583_v14, %v2483_v7 }
0x19ed   :  { %2493 = vst.msk [vmem:[#allocation2 + $0x8] sm:$0xff] %vm45_vm0, %v2491_v16 }
0x19ee   :  { %2492 = vst.msk [vmem:[#allocation2] sm:$0xff] %vm45_vm0, %v2490_v17 }
0x19ef   :  { %3223 = shalt.err (!%p3220_p4)
}
0x19f0   :  { %s3224_s12 = scalar_lea.hbm %s3733_s3, 256 }
0x19f1   :  { %p3225_p5 = scmp.ne.s32.totalorder %s3733_s3, %s3224_s12  ;;  %p3228_p6 = scmp.lt.u32.totalorder %s3224_s12, %s3733_s3 }
0x19f3   :  { %p3230_p7 = pnand %p3228_p6, %p3225_p5 }
0x19f5   :  { %3233 = shalt.err (!%p3230_p7)
}
0x19f6   :  { %s3252_s17 = smov 128  }
0x19f7   :  { %2505 = dma.vmem_to_hbm [thread:$0]  %s2500_s0, 256, %s3733_s3, [#allocation3], %s3252_s17, %s3252_s17, %s3247_s18  }
0x19f8   :  { %3234 = dma.done.wait [#allocation3], 256  }
0x19f9   :  { %3235 = vsyncadd [#allocation3], 4294967040 }
0x19fa   :  { %2509 = vsyncpa [#allocation3], 1 }

</bundles_post_ra>
